<compile_context>
chip_gen: v6e
topology: v6e:2x2x1
jax: 0.10.0
libtpu: 0.0.40
codegen_flags: <defaults>
</compile_context>

<pallas_src>
import jax
import jax.numpy as jnp
from jax.experimental import pallas as pl
from jax.experimental.pallas import tpu as pltpu


# ----------------------------- kernels ------------------------------------ #
def _sine_kernel_bias(x_ref, wt_ref, b_ref, o_ref):
    # x_ref : (tm, in_f)   wt_ref: (in_f, tn)   b_ref: (1, tn)   o_ref: (tm, tn)
    z = jnp.dot(x_ref[...], wt_ref[...], preferred_element_type=jnp.float32)
    z = z + b_ref[...].astype(jnp.float32)       # broadcast (1, tn) over (tm, tn)
    o_ref[...] = jnp.sin(z).astype(o_ref.dtype)


def _sine_kernel_nobias(x_ref, wt_ref, o_ref):
    z = jnp.dot(x_ref[...], wt_ref[...], preferred_element_type=jnp.float32)
    o_ref[...] = jnp.sin(z).astype(o_ref.dtype)


# ----------------------------- helpers ------------------------------------ #
def _round_up(n, m):
    return ((n + m - 1) // m) * m


def _pick_tn(out_f_padded, tn_max):
    """Largest multiple of 128 that divides out_f_padded and is <= tn_max."""
    k = out_f_padded // 128
    dmax = max(1, tn_max // 128)
    for d in range(min(dmax, k), 0, -1):
        if k % d == 0:
            return 128 * d
    return 128


def prepare_sine_layer_params(weight, bias, w0, use_bias, compute_dtype=None):
    """One-time (amortized) parameter prep.

    - folds w0 (== SineAct.a) into weight/bias so the kernel is just sin(z)
    - transposes to lane-friendly (in_features, out_features) layout
    - zero-pads out_features up to a multiple of 128 for lane-dense stores
    - optionally casts the weight to a narrower MXU dtype (e.g. bfloat16)
    """
    out_f, in_f = weight.shape
    out_f_p = _round_up(out_f, 128)
    wt = (jnp.float32(w0) * weight.astype(jnp.float32)).T            # (in_f, out_f)
    if out_f_p != out_f:
        wt = jnp.pad(wt, ((0, 0), (0, out_f_p - out_f)))
    if compute_dtype is not None:
        wt = wt.astype(compute_dtype)
    b = None
    if use_bias:
        b = (jnp.float32(w0) * bias.astype(jnp.float32)).reshape(1, out_f)
        if out_f_p != out_f:
            b = jnp.pad(b, ((0, 0), (0, out_f_p - out_f)))           # bias stays f32
    return wt, b


# ----------------------------- forward ------------------------------------ #
def sine_layer_forward(x, wt, b, out_features, *, tm=256, tn_max=512,
                       compute_dtype=None):
    """x: (..., in_f) ; wt: (in_f, out_f_padded) pre-scaled by w0 ;
    b: (1, out_f_padded) or None.  Returns (..., out_features)."""
    orig_shape = x.shape
    in_f = orig_shape[-1]
    assert wt.shape[0] == in_f
    out_f_p = wt.shape[1]
    out_dtype = x.dtype

    # Flatten leading dims (nn.Linear semantics over arbitrary batch dims).
    x2 = x.reshape(-1, in_f)
    B = x2.shape[0]

    # Tile sizing: batch tile is a multiple of 8 (f32 sublane), capped by the
    # (rounded-up) batch; output tile is a 128-multiple divisor of out_f_p.
    tm_eff = _round_up(min(max(tm, 8), _round_up(B, 8)), 8)
    tn = _pick_tn(out_f_p, tn_max)

    # Pad the batch so the grid divides exactly (no B % tm restriction).
    B_p = _round_up(B, tm_eff)
    if B_p != B:
        x2 = jnp.pad(x2, ((0, B_p - B), (0, 0)))
    if compute_dtype is not None and x2.dtype != compute_dtype:
        x2 = x2.astype(compute_dtype)

    grid = (B_p // tm_eff, out_f_p // tn)

    # Grid order (i, j): inner axis j sweeps the weight tiles, so the (usually
    # much larger) activation tile is fetched once per i and reused across j.
    in_specs = [
        pl.BlockSpec((tm_eff, in_f), lambda i, j: (i, 0)),   # activations
        pl.BlockSpec((in_f, tn), lambda i, j: (0, j)),       # weight tile
    ]
    args = [x2, wt]
    if b is not None:
        in_specs.append(pl.BlockSpec((1, tn), lambda i, j: (0, j)))
        args.append(b)
        kernel = _sine_kernel_bias
    else:
        kernel = _sine_kernel_nobias

    out = pl.pallas_call(
        kernel,
        out_shape=jax.ShapeDtypeStruct((B_p, out_f_p), out_dtype),
        grid_spec=pltpu.PrefetchScalarGridSpec(
            num_scalar_prefetch=0,
            grid=grid,
            in_specs=in_specs,
            out_specs=pl.BlockSpec((tm_eff, tn), lambda i, j: (i, j)),
        ),
        compiler_params=pltpu.CompilerParams(
            dimension_semantics=("parallel", "parallel")),
    )(*args)

    if B_p != B or out_f_p != out_features:
        out = out[:B, :out_features]
    return out.reshape(orig_shape[:-1] + (out_features,))


# ----------------------------- init (matches PyTorch) ---------------------- #
def init_sine_layer_params(key, in_features, out_features, w0, is_first, use_bias):
    """Re-implementation of SineLayer.init_weights (synthetic, deterministic)."""
    kw, kb = jax.random.split(key)
    if is_first:
        w_std = 1.0 / in_features
    else:
        w_std = (6.0 / in_features) ** 0.5 / w0
    weight = jax.random.uniform(
        kw, (out_features, in_features), jnp.float32, minval=-w_std, maxval=w_std)
    if use_bias:
        if is_first:
            # PyTorch default Linear bias init: U(-1/sqrt(in), 1/sqrt(in))
            b_std = 1.0 / (in_features ** 0.5)
            bias = jax.random.uniform(
                kb, (out_features,), jnp.float32, minval=-b_std, maxval=b_std)
        else:
            bias = jnp.zeros((out_features,), jnp.float32)
    else:
        bias = jnp.zeros((out_features,), jnp.float32)
    return weight, bias


# ----------------------------- demo / check -------------------------------- #
if __name__ == "__main__":
    # Module config (matches SineLayer.__init__)
    in_features, out_features = 32, 64
    w0 = 30.0
    is_first = True
    use_bias = True

    key = jax.random.PRNGKey(0)
    kx, kp = jax.random.split(key)

    batch = 100  # deliberately not a multiple of 8/tile -> exercises padding path
    x = jax.random.normal(kx, (batch, in_features), jnp.float32)
    weight, bias = init_sine_layer_params(
        kp, in_features, out_features, w0, is_first, use_bias)

    # Pure-JAX reference of the PyTorch forward: sin(w0 * (x @ W^T + b))
    ref = jnp.sin(w0 * (x @ weight.T + bias))

    # --- f32 MXU path (exact check) ---
    wt, b = prepare_sine_layer_params(weight, bias, w0, use_bias)
    out = sine_layer_forward(x, wt, b, out_features, tm=256)
    out = jax.block_until_ready(out)
    assert out.shape == (batch, out_features)
    assert jnp.allclose(out, ref, atol=1e-4, rtol=1e-4)

    # --- bf16 MXU path (half the DMA bytes, ~2x MXU throughput; loose check) ---
    wt16, b16 = prepare_sine_layer_params(
        weight, bias, w0, use_bias, compute_dtype=jnp.bfloat16)
    out16 = sine_layer_forward(
        x, wt16, b16, out_features, tm=256, compute_dtype=jnp.bfloat16)
    out16 = jax.block_until_ready(out16)
    assert out16.shape == (batch, out_features)
    assert bool(jnp.max(jnp.abs(out16 - ref)) < 0.2)

    # --- use_bias=False variant ---
    wt_nb, _ = prepare_sine_layer_params(weight, None, w0, use_bias=False)
    out_nb = jax.block_until_ready(
        sine_layer_forward(x, wt_nb, None, out_features, tm=256))
    assert jnp.allclose(out_nb, jnp.sin(w0 * (x @ weight.T)), atol=1e-4, rtol=1e-4)

    # --- nn.Linear-style leading dims: (B, S, in_f) ---
    x3 = jax.random.normal(kx, (2, 7, in_features), jnp.float32)
    out3 = jax.block_until_ready(sine_layer_forward(x3, wt, b, out_features))
    ref3 = jnp.sin(w0 * (x3 @ weight.T + bias))
    assert out3.shape == (2, 7, out_features)
    assert jnp.allclose(out3, ref3, atol=1e-4, rtol=1e-4)

    print("KERNEL_OK")
</pallas_src>

<mosaic_0001>
module attributes {stable_mosaic.version = 11 : i64} {
  func.func @_sine_kernel_bias(%arg0: i32, %arg1: i32, %arg2: memref<104x32xf32, #tpu.memory_space<vmem>>, %arg3: memref<32x128xf32, #tpu.memory_space<vmem>>, %arg4: memref<1x128xf32, #tpu.memory_space<vmem>>, %arg5: memref<104x128xf32, #tpu.memory_space<vmem>>) attributes {dimension_semantics = [#tpu.dimension_semantics<parallel>, #tpu.dimension_semantics<parallel>], iteration_bounds = array<i64: 1, 1>, scalar_prefetch = 0 : i64, scratch_operands = 0 : i64, tpu.core_type = #tpu.core_type<tc>, window_params = [{transform_indices = @transform_0, window_bounds = array<i64: 104, 32>}, {transform_indices = @transform_1, window_bounds = array<i64: 32, 128>}, {transform_indices = @transform_2, window_bounds = array<i64: 1, 128>}, {transform_indices = @transform_3, window_bounds = array<i64: 104, 128>}]} {
    %c0 = arith.constant 0 : index
    %c0_0 = arith.constant 0 : index
    %0 = vector.load %arg2[%c0, %c0_0] : memref<104x32xf32, #tpu.memory_space<vmem>>, vector<104x32xf32>
    %c0_1 = arith.constant 0 : index
    %c0_2 = arith.constant 0 : index
    %1 = vector.load %arg3[%c0_1, %c0_2] : memref<32x128xf32, #tpu.memory_space<vmem>>, vector<32x128xf32>
    %cst = arith.constant dense<0.000000e+00> : vector<104x128xf32>
    %2 = tpu.matmul %0, %1, %cst {dimension_numbers = #tpu.dot_dimension_numbers<[1], [0], [0], [1], [0, 0, 1, 1], [], []>} : vector<104x32xf32>, vector<32x128xf32>, vector<104x128xf32> -> vector<104x128xf32>
    %c0_3 = arith.constant 0 : index
    %c0_4 = arith.constant 0 : index
    %3 = vector.load %arg4[%c0_3, %c0_4] : memref<1x128xf32, #tpu.memory_space<vmem>>, vector<1x128xf32>
    %4 = vector.broadcast %3 : vector<1x128xf32> to vector<104x128xf32>
    %5 = arith.addf %2, %4 : vector<104x128xf32>
    %6 = math.sin %5 : vector<104x128xf32>
    %c0_5 = arith.constant 0 : index
    %c0_6 = arith.constant 0 : index
    %7 = vector.load %arg5[%c0_5, %c0_6] : memref<104x128xf32, #tpu.memory_space<vmem>>, vector<104x128xf32>
    tpu.vector_store %arg5[%c0_5, %c0_6], %6 {strides = array<i32>} : memref<104x128xf32, #tpu.memory_space<vmem>>, vector<104x128xf32>,
    return
  }
  func.func @transform_0(%arg0: i32, %arg1: i32) -> (i32, i32) {
    %c0_i32 = arith.constant 0 : i32
    %c0_i32_0 = arith.constant 0 : i32
    return %arg0, %c0_i32 : i32, i32
  }
  func.func @transform_1(%arg0: i32, %arg1: i32) -> (i32, i32) {
    %c0_i32 = arith.constant 0 : i32
    %c0_i32_0 = arith.constant 0 : i32
    return %c0_i32, %arg1 : i32, i32
  }
  func.func @transform_2(%arg0: i32, %arg1: i32) -> (i32, i32) {
    %c0_i32 = arith.constant 0 : i32
    %c0_i32_0 = arith.constant 0 : i32
    return %c0_i32, %arg1 : i32, i32
  }
  func.func @transform_3(%arg0: i32, %arg1: i32) -> (i32, i32) {
    %c0_i32 = arith.constant 0 : i32
    return %arg0, %arg1 : i32, i32
  }
}

</mosaic_0001>

<bundles_post_ra>
// kernel: tpu_custom_call.1
= control target key start
LH: loop header
LB: loop body
LE: loop exit
PB: predicated region body
PF: predicated region fallthrough
CT: control target
= control target key end

     0   :  { %v1867_v1 = vmov 0.0   ;;  %s2874_s0 = inlined_call_operand.vmem [shape: f32[104,32], index: 0, kind: input, shape index: {}]   ;;  %s2875_s1 = inlined_call_operand.vmem [shape: f32[32,128], index: 1, kind: input, shape index: {}]   ;;  %s2876_s2 = inlined_call_operand.vmem [shape: f32[1,128], index: 2, kind: input, shape index: {}]   ;;  %s2877_s3 = inlined_call_operand.hbm [shape: f32[104,128], index: 3, kind: output, shape index: {}]  }
   0x1   :  { %v31_v0 = vld [vmem:[%s2875_s1 + $0x18] sm:$0xff]  ;;  %1673 = vmatprep.subr.mxu0 %v1867_v1  ;;  %1720 = vmatprep.subr.mxu1 %v1867_v1  ;;  %v30_v2 = vld [vmem:[%s2875_s1 + $0x10] sm:$0xff]  ;;  %v29_v3 = vld [vmem:[%s2875_s1 + $0x8] sm:$0xff] }
   0x2   :  { %1674 = vmatpush3.msra.mxu0 %v31_v0  ;;  %1724 = vmatpush3.msra.mxu1 %v31_v0  ;;  %v28_v4 = vld [vmem:[%s2875_s1] sm:$0xff] }
   0x3   :  { %1675 = vmatprep.subr.mxu0 %v1867_v1  ;;  %1721 = vmatprep.subr.mxu1 %v1867_v1 }
   0x4   :  { %1676 = vmatpush3.msra.mxu0 %v30_v2  ;;  %1725 = vmatpush3.msra.mxu1 %v30_v2 }
   0x5   :  { %1677 = vmatprep.subr.mxu0 %v1867_v1  ;;  %1722 = vmatprep.subr.mxu1 %v1867_v1 }
   0x6   :  { %1678 = vmatpush3.msra.mxu0 %v29_v3  ;;  %1726 = vmatpush3.msra.mxu1 %v29_v3 }
   0x7   :  { %8 = vsyncpa [#allocation3], 0  ;;  %1679 = vmatprep.subr.mxu0 %v1867_v1  ;;  %1723 = vmatprep.subr.mxu1 %v1867_v1  ;;  %v15_v5 = vld [vmem:[%s2874_s0] sm:$0xff]  ;;  %vm39_vm0 = vcmask 261120   ;;  %v22_v6 = vld [vmem:[%s2874_s0 + $0x38] sm:$0xff]  ;;  %vm1868_vm1 = vmmov 0  }
   0x8   :  { %1680 = vmatpush3.msra.mxu0 %v28_v4  ;;  %1727 = vmatpush3.msra.mxu1 %v28_v4  ;;  %v16_v7 = vld [vmem:[%s2874_s0 + $0x8] sm:$0xff]  ;;  %v23_v8 = vld [vmem:[%s2874_s0 + $0x40] sm:$0xff]  ;;  %v17_v9 = vld [vmem:[%s2874_s0 + $0x10] sm:$0xff] }
   0x9   :  { %1681 = vmatprep.mubr.msk.f32.mxu0 %vm1868_vm1, %v1867_v1  ;;  %1702 = vmatprep.mubr.msk.f32.mxu1 %vm1868_vm1, %v1867_v1  ;;  %v24_v10 = vld [vmem:[%s2874_s0 + $0x48] sm:$0xff]  ;;  %v18_v11 = vld [vmem:[%s2874_s0 + $0x18] sm:$0xff]  ;;  %v25_v12 = vld [vmem:[%s2874_s0 + $0x50] sm:$0xff] }
   0xa   :  { %1682 = vmatmul.mubr.msk.f32.vlgmr.msra.gmra.mxu0 %vm39_vm0, %v15_v5  ;;  %1703 = vmatmul.mubr.msk.f32.vlgmr.msra.gmra.mxu1 %vm39_vm0, %v22_v6  ;;  %v19_v13 = vld [vmem:[%s2874_s0 + $0x20] sm:$0xff]  ;;  %v26_v14 = vld [vmem:[%s2874_s0 + $0x58] sm:$0xff]  ;;  %v20_v15 = vld [vmem:[%s2874_s0 + $0x28] sm:$0xff]  ;;  %v1870_v5 = vmov 2475754826  }
   0xb   :  { %1684 = vmatprep.mubr.msk.f32.mxu0 %vm1868_vm1, %v1867_v1  ;;  %1705 = vmatprep.mubr.msk.f32.mxu1 %vm1868_vm1, %v1867_v1  ;;  %v27_v16 = vld [vmem:[%s2874_s0 + $0x60] sm:$0xff]  ;;  %v21_v17 = vld [vmem:[%s2874_s0 + $0x30] sm:$0xff] }
   0xc   :  { %v1978_v18 = vld [vmem:[%s2876_s2] ss:$0 sm:$0xff] }
   0xe   :  { %1685 = vmatmul.mubr.msk.f32.gmra.mxu0 %vm39_vm0, %v16_v7  ;;  %1706 = vmatmul.mubr.msk.f32.gmra.mxu1 %vm39_vm0, %v23_v8  ;;  %v1871_v7 = vmov 2131351028  }
   0xf   :  { %1687 = vmatprep.mubr.msk.f32.mxu0 %vm1868_vm1, %v1867_v1  ;;  %1708 = vmatprep.mubr.msk.f32.mxu1 %vm1868_vm1, %v1867_v1 }
  0x12   :  { %1688 = vmatmul.mubr.msk.f32.gmra.mxu0 %vm39_vm0, %v17_v9  ;;  %1709 = vmatmul.mubr.msk.f32.gmra.mxu1 %vm39_vm0, %v24_v10  ;;  %v1872_v9 = vmov 2102212464  }
  0x13   :  { %1690 = vmatprep.mubr.msk.f32.mxu0 %vm1868_vm1, %v1867_v1  ;;  %1711 = vmatprep.mubr.msk.f32.mxu1 %vm1868_vm1, %v1867_v1 }
  0x16   :  { %1691 = vmatmul.mubr.msk.f32.gmra.mxu0 %vm39_vm0, %v18_v11  ;;  %1712 = vmatmul.mubr.msk.f32.gmra.mxu1 %vm39_vm0, %v25_v12  ;;  %v1873_v11 = vmov 920167782  }
  0x17   :  { %1693 = vmatprep.mubr.msk.f32.mxu0 %vm1868_vm1, %v1867_v1  ;;  %1714 = vmatprep.mubr.msk.f32.mxu1 %vm1868_vm1, %v1867_v1 }
  0x1a   :  { %1694 = vmatmul.mubr.msk.f32.gmra.mxu0 %vm39_vm0, %v19_v13  ;;  %1715 = vmatmul.mubr.msk.f32.gmra.mxu1 %vm39_vm0, %v26_v14 }
  0x1b   :  { %1696 = vmatprep.mubr.msk.f32.mxu0 %vm1868_vm1, %v1867_v1  ;;  %1717 = vmatprep.mubr.msk.f32.mxu1 %vm1868_vm1, %v1867_v1 }
  0x1e   :  { %1697 = vmatmul.mubr.msk.f32.gmra.mxu0 %vm39_vm0, %v20_v15  ;;  %1718 = vmatmul.mubr.msk.f32.gmra.mxu1 %vm39_vm0, %v27_v16 }
  0x1f   :  { %1699 = vmatprep.mubr.msk.f32.mxu0 %vm1868_vm1, %v1867_v1  ;;  %v1869_v1 = vmov 683565275  }
  0x22   :  { %1700 = vmatmul.mubr.msk.f32.gmra.mxu0 %vm39_vm0, %v21_v17 }
  0xca   :  { %v145_v19 = vpop.f32.mrf.mxu0  ;;  %v180_v20 = vpop.f32.mrf.mxu1 }
  0xcb   :  { %v1981_v21 = vadd.f32 %v1978_v18, %v145_v19  ;;  %v1984_v22 = vadd.f32 %v1978_v18, %v180_v20  ;;  %v1874_v19 = vmov 1326507024  }
  0xcc   :  { %v1683_v23 = vpop.f32.mrf.mxu0  ;;  %v1704_v24 = vpop.f32.mrf.mxu1 }
  0xcd   :  { %v209_v25 = vand.u32 2147483647, %v1981_v21  ;;  %v212_v26 = vand.u32 2139095040, %v1981_v21  ;;  %v937_v27 = vand.u32 2147483647, %v1984_v22  ;;  %v940_v28 = vand.u32 2139095040, %v1984_v22 }
  0xce   :  { %v150_v29 = vpop.f32.mrf.mxu0  ;;  %v1990_v30 = vpop.f32.mrf.mxu1  ;;  %vm211_vm15 = vcmp.lt.s32.totalorder %v1981_v21, 0 }
  0xcf   :  { %v213_v31 = vshrl.u32 %v212_v26, 23  ;;  %v216_v32 = vand.u32 8388607, %v209_v25  ;;  %v1995_v33 = vadd.f32 %v1978_v18, %v150_v29  ;;  %v941_v34 = vshrl.u32 %v940_v28, 23 }
  0xd0   :  { %v944_v35 = vand.u32 8388607, %v937_v27  ;;  %v1686_v36 = vpop.f32.mrf.mxu0  ;;  %v1707_v37 = vpop.f32.mrf.mxu1  ;;  %vm2114_vm0 = vcmp.le.f32.partialorder %v209_v25, 0.7853982 }
  0xd1   :  { %v1604_v38 = vadd.s32 4294967169, %v213_v31  ;;  %v1632_v39 = vadd.s32 4294967169, %v941_v34  ;;  %v316_v40 = vand.u32 2139095040, %v1995_v33  ;;  %v217_v43 = vor.u32 8388608, %v216_v32 }
  0xd2   :  { %v2000_v41 = vpop.f32.mrf.mxu0  ;;  %v2002_v42 = vpop.f32.mrf.mxu1  ;;  %v945_v45 = vor.u32 8388608, %v944_v35  ;;  %v313_v47 = vand.u32 2147483647, %v1995_v33 }
  0xd3   :  { %v219_v44 = vadd.s32 1, %v1604_v38  ;;  %v947_v46 = vadd.s32 1, %v1632_v39  ;;  %v317_v48 = vshrl.u32 %v316_v40, 23  ;;  %v2009_v58 = vshll.u32 %v217_v43, 8 }
  0xd4   :  { %v1689_v49 = vpop.f32.mrf.mxu0  ;;  %v1710_v50 = vpop.f32.mrf.mxu1  ;;  %v2013_v60 = vshll.u32 %v945_v45, 8  ;;  %v2017_v61 = vand.u32 8388607, %v313_v47 }
  0xd5   :  { %vm220_vm2 = vcmp.gt.s32.totalorder %v219_v44, 0  ;;  %vm948_vm3 = vcmp.gt.s32.totalorder %v947_v46, 0  ;;  %v1608_v52 = vadd.s32 4294967169, %v317_v48 }
  0xd6   :  { %v221_v51 = vsel %vm220_vm2, %v219_v44, 0  ;;  %v2005_v53 = vpop.f32.mrf.mxu0  ;;  %v2007_v54 = vpop.f32.mrf.mxu1  ;;  %v949_v57 = vsel %vm948_vm3, %v947_v46, 0 }
  0xd7   :  { %v222_v55 = vshrl.u32 %v221_v51, 5  ;;  %v223_v56 = vand.u32 31, %v221_v51  ;;  %v2011_v59 = vshrl.u32 %v949_v57, 5  ;;  %v951_v3 = vand.u32 31, %v949_v57 }
  0xd8   :  { %v1692_v62 = vpop.f32.mrf.mxu0  ;;  %v1713_v63 = vpop.f32.mrf.mxu1  ;;  %v2020_v4 = vadd.s32 1, %v1608_v52 }
  0xd9   :  { %v224_v0 = vsub.s32 32, %v223_v56  ;;  %v226_v2 = vshll.u32 %v1869_v1, %v223_v56  ;;  %v229_v6 = vshll.u32 %v1870_v5, %v223_v56  ;;  %v232_v8 = vshll.u32 %v1871_v7, %v223_v56 }
  0xda   :  { %v235_v10 = vshll.u32 %v1872_v9, %v223_v56  ;;  %v238_v12 = vshll.u32 %v1873_v11, %v223_v56  ;;  %vm241_vm4 = vcmp.lt.s32.totalorder %v222_v55, 1  ;;  %vm243_vm5 = vcmp.lt.s32.totalorder %v222_v55, 3 }
  0xdb   :  { %v227_v13 = vshrl.u32 %v1870_v5, %v224_v0  ;;  %v230_v14 = vshrl.u32 %v1871_v7, %v224_v0  ;;  %v233_v15 = vshrl.u32 %v1872_v9, %v224_v0  ;;  %v225_v16 = vshrl.u32 %v1869_v1, %v224_v0 }
  0xdc   :  { %v236_v17 = vshrl.u32 %v1873_v11, %v224_v0  ;;  %v239_v20 = vshrl.u32 %v1874_v19, %v224_v0  ;;  %v952_v28 = vsub.s32 32, %v951_v3  ;;  %vm244_vm6 = vcmp.lt.s32.totalorder %v222_v55, 4 }
  0xdd   :  { %v228_v23 = vor.u32 %v227_v13, %v226_v2  ;;  %v231_v24 = vor.u32 %v230_v14, %v229_v6  ;;  %v234_v26 = vor.u32 %v233_v15, %v232_v8  ;;  %v954_v32 = vshll.u32 %v1869_v1, %v951_v3 }
  0xde   :  { %v237_v29 = vor.u32 %v236_v17, %v235_v10  ;;  %v240_v31 = vor.u32 %v239_v20, %v238_v12  ;;  %v957_v43 = vshll.u32 %v1870_v5, %v951_v3  ;;  %vm242_vm7 = vcmp.lt.s32.totalorder %v222_v55, 2 }
  0xdf   :  { %v245_v34 = vsel %vm241_vm4, %v225_v16, %v228_v23  ;;  %v246_v35 = vsel %vm244_vm6, %v234_v26, 2102212464  ;;  %v249_v36 = vsel %vm241_vm4, %v228_v23, %v231_v24  ;;  %v253_v37 = vsel %vm241_vm4, %v231_v24, %v234_v26 }
  0xe0   :  { %v247_v38 = vsel %vm243_vm5, %v231_v24, %v246_v35  ;;  %v250_v39 = vsel %vm244_vm6, %v237_v29, 920167782  ;;  %v254_v40 = vsel %vm244_vm6, %v240_v31, 1326507024  ;;  %v955_v46 = vshrl.u32 %v1870_v5, %v952_v28 }
  0xe1   :  { %v251_v44 = vsel %vm243_vm5, %v234_v26, %v250_v39  ;;  %v255_v45 = vsel %vm243_vm5, %v237_v29, %v254_v40  ;;  %v248_v48 = vsel %vm242_vm7, %v245_v34, %v247_v38  ;;  %v958_v51 = vshrl.u32 %v1871_v7, %v952_v28 }
  0xe2   :  { %v252_v49 = vsel %vm242_vm7, %v249_v36, %v251_v44  ;;  %v256_v50 = vsel %vm242_vm7, %v253_v37, %v255_v45  ;;  %v956_v63 = vor.u32 %v955_v46, %v954_v32  ;;  %v960_v55 = vshll.u32 %v1871_v7, %v951_v3 }
  0xe3   :  { %v2043_v52 = vmul.u32.u64.low %v2009_v58, %v256_v50  ;;  %v2044_v56 = vmul.u32.u64.high %v2009_v58, %v256_v50, %v2043_v52  ;;  %v2047_v57 = vmul.u32.u64.low %v2009_v58, %v252_v49  ;;  %v2048_v62 = vmul.u32.u64.high %v2009_v58, %v252_v49, %v2047_v57 }
  0xe4   :  { %v959_v0 = vor.u32 %v958_v51, %v957_v43  ;;  %v961_v2 = vshrl.u32 %v1872_v9, %v952_v28  ;;  %v963_v6 = vshll.u32 %v1872_v9, %v951_v3  ;;  %v964_v8 = vshrl.u32 %v1873_v11, %v952_v28 }
  0xe5   :  { %v966_v10 = vshll.u32 %v1873_v11, %v951_v3  ;;  %v967_v12 = vshrl.u32 %v1874_v19, %v952_v28  ;;  %v264_v13 = vmul.u32 %v2009_v58, %v248_v48  ;;  %v953_v14 = vshrl.u32 %v1869_v1, %v952_v28  ;;  %v2086_v48 = vpop.f32.mrf.mxu0 }
  0xe6   :  { %v962_v15 = vor.u32 %v961_v2, %v960_v55  ;;  %vm969_vm8 = vcmp.lt.s32.totalorder %v2011_v59, 1  ;;  %vm266_vm9 = vc.u32 %v2044_v56, %v2047_v57  ;;  %v267_v16 = vadd.s32 1, %v2048_v62 }
  0xe7   :  { %v965_v17 = vor.u32 %v964_v8, %v963_v6  ;;  %vm970_vm10 = vcmp.lt.s32.totalorder %v2011_v59, 2  ;;  %v968_v20 = vor.u32 %v967_v12, %v966_v10  ;;  %vm971_vm11 = vcmp.lt.s32.totalorder %v2011_v59, 3  ;;  %v1695_v52 = vpop.f32.mrf.mxu0 }
  0xe8   :  { %vm972_vm12 = vcmp.lt.s32.totalorder %v2011_v59, 4  ;;  %v977_v3 = vsel %vm969_vm8, %v956_v63, %v959_v0  ;;  %v268_v58 = vsel %vm266_vm9, %v267_v16, %v2048_v62  ;;  %v981_v26 = vsel %vm969_vm8, %v959_v0, %v962_v15 }
  0xe9   :  { %v974_v23 = vsel %vm972_vm12, %v962_v15, 2102212464  ;;  %v978_v24 = vsel %vm972_vm12, %v965_v17, 920167782  ;;  %v269_v28 = vadd.s32 %v268_v58, %v264_v13  ;;  %v973_v29 = vsel %vm969_vm8, %v953_v14, %v956_v63 }
  0xea   :  { %v979_v31 = vsel %vm971_vm11, %v962_v15, %v978_v24  ;;  %v982_v32 = vsel %vm972_vm12, %v968_v20, 1326507024  ;;  %v975_v34 = vsel %vm971_vm11, %v959_v0, %v974_v23  ;;  %vm324_vm13 = vcmp.gt.s32.totalorder %v2020_v4, 0 }
  0xeb   :  { %v980_v35 = vsel %vm970_vm10, %v977_v3, %v979_v31  ;;  %v983_v36 = vsel %vm971_vm11, %v965_v17, %v982_v32  ;;  %v270_v37 = vadd.s32 536870912, %v269_v28  ;;  %v325_v45 = vsel %vm324_vm13, %v2020_v4, 0 }
  0xec   :  { %v984_v38 = vsel %vm970_vm10, %v981_v26, %v983_v36  ;;  %v2073_v39 = vmul.u32.u64.low %v2013_v60, %v980_v35  ;;  %v2074_v40 = vmul.u32.u64.high %v2013_v60, %v980_v35, %v2073_v39  ;;  %v2084_v46 = vadd.f32 %v1978_v18, %v1990_v30 }
  0xed   :  { %v2078_v43 = vmul.u32.u64.low %v2013_v60, %v984_v38  ;;  %v2079_v44 = vmul.u32.u64.high %v2013_v60, %v984_v38, %v2078_v43  ;;  %v271_v49 = vshrl.u32 %v270_v37, 30  ;;  %v976_v50 = vsel %vm970_vm10, %v973_v29, %v975_v34 }
  0xee   :  { %v327_v51 = vand.u32 31, %v325_v45  ;;  %v995_v63 = vadd.s32 1, %v2074_v40  ;;  %v321_v0 = vor.u32 8388608, %v2017_v61  ;;  %v992_v55 = vmul.u32 %v2013_v60, %v976_v50 }
  0xef   :  { %v272_v62 = vshll.u32 %v271_v49, 30  ;;  %vm994_vm14 = vc.u32 %v2079_v44, %v2073_v39  ;;  %v1044_v4 = vand.u32 2139095040, %v2084_v46  ;;  %v1041_v12 = vand.u32 2147483647, %v2084_v46 }
  0xf0   :  { %v328_v30 = vsub.s32 32, %v327_v51  ;;  %v996_v6 = vsel %vm994_vm14, %v995_v63, %v2074_v40  ;;  %v2098_v10 = vshll.u32 %v321_v0, 8  ;;  %v326_v16 = vshrl.u32 %v325_v45, 5 }
  0xf1   :  { %v273_v2 = vsub.s32 %v269_v28, %v272_v62  ;;  %v997_v59 = vadd.s32 %v996_v6, %v992_v55  ;;  %v1045_v14 = vshrl.u32 %v1044_v4, 23  ;;  %v295_v3 = vsub.s32 4, %v271_v49 }
  0xf2   :  { %v331_v60 = vshrl.u32 %v1870_v5, %v328_v30  ;;  %v334_v13 = vshrl.u32 %v1871_v7, %v328_v30  ;;  %v337_v17 = vshrl.u32 %v1872_v9, %v328_v30  ;;  %v340_v20 = vshrl.u32 %v1873_v11, %v328_v30 }
  0xf3   :  { %v275_v8 = vsub.s32 0, %v273_v2  ;;  %v998_v61 = vadd.s32 536870912, %v997_v59  ;;  %v330_v23 = vshll.u32 %v1869_v1, %v327_v51  ;;  %v333_v24 = vshll.u32 %v1870_v5, %v327_v51 }
  0xf4   :  { %v336_v28 = vshll.u32 %v1871_v7, %v327_v51  ;;  %v339_v29 = vshll.u32 %v1872_v9, %v327_v51  ;;  %v343_v31 = vshrl.u32 %v1874_v19, %v328_v30  ;;  %v265_v34 = vadd.s32 %v2047_v57, %v2044_v56 }
  0xf5   :  { %v1605_v15 = vmin.u32 %v275_v8, %v273_v2  ;;  %v2105_v58 = vshrl.u32 %v998_v61, 30  ;;  %v332_v36 = vor.u32 %v331_v60, %v330_v23  ;;  %v335_v37 = vor.u32 %v334_v13, %v333_v24 }
  0xf6   :  { %v338_v40 = vor.u32 %v337_v17, %v336_v28  ;;  %v341_v43 = vor.u32 %v340_v20, %v339_v29  ;;  %v342_v45 = vshll.u32 %v1873_v11, %v327_v51  ;;  %v296_v50 = vsel %vm211_vm15, %v295_v3, %v271_v49 }
  0xf7   :  { %v277_v26 = vclz %v1605_v15  ;;  %v1000_v35 = vshll.u32 %v2105_v58, 30  ;;  %v329_v25 = vshrl.u32 %v1869_v1, %v328_v30  ;;  %vm345_vm1 = vcmp.lt.s32.totalorder %v326_v16, 1 }
  0xf8   :  { %v344_v62 = vor.u32 %v343_v31, %v342_v45  ;;  %vm346_vm3 = vcmp.lt.s32.totalorder %v326_v16, 2  ;;  %vm347_vm4 = vcmp.lt.s32.totalorder %v326_v16, 3  ;;  %vm348_vm5 = vcmp.lt.s32.totalorder %v326_v16, 4 }
  0xf9   :  { %v1606_v38 = vadd.s32 4294967294, %v277_v26  ;;  %v2124_v52 = vsub.s32 %v997_v59, %v1000_v35  ;;  %v353_v63 = vsel %vm345_vm1, %v332_v36, %v335_v37  ;;  %v350_v55 = vsel %vm348_vm5, %v338_v40, 2102212464 }
  0xfa   :  { %v354_v4 = vsel %vm348_vm5, %v341_v43, 920167782  ;;  %v357_v59 = vsel %vm345_vm1, %v335_v37, %v338_v40  ;;  %v358_v13 = vsel %vm348_vm5, %v344_v62, 1326507024  ;;  %vm939_vm6 = vcmp.lt.s32.totalorder %v1984_v22, 0 }
  0xfb   :  { %vm1607_vm2 = vcmp.lt.s32.totalorder %v1606_v38, 0  ;;  %v1003_v57 = vsub.s32 0, %v2124_v52  ;;  %v355_v30 = vsel %vm347_vm4, %v338_v40, %v354_v4  ;;  %v349_v17 = vsel %vm345_vm1, %v329_v25, %v332_v36 }
  0xfc   :  { %v280_v56 = vsel %vm1607_vm2, 0, %v1606_v38  ;;  %v356_v60 = vsel %vm346_vm3, %v353_v63, %v355_v30  ;;  %v351_v20 = vsel %vm347_vm4, %v335_v37, %v350_v55  ;;  %v1636_v3 = vadd.s32 4294967169, %v1045_v14 }
  0xfd   :  { %v281_v0 = vsub.s32 32, %v280_v56  ;;  %v285_v51 = vsub.s32 4294967266, %v280_v56  ;;  %v282_v49 = vshll.u32 %v273_v2, %v280_v56  ;;  %v1633_v6 = vmin.u32 %v1003_v57, %v2124_v52 }
  0xfe   :  { %v298_v24 = vsel %vm2114_vm0, 0, %v296_v50  ;;  %v359_v26 = vsel %vm347_vm4, %v341_v43, %v358_v13  ;;  %vm2147_vm7 = vcmp.le.f32.partialorder %v937_v27, 0.7853982  ;;  %v352_v36 = vsel %vm346_vm3, %v349_v17, %v351_v20  ;;  %v2158_v50 = vpop.f32.mrf.mxu1 }
  0xff   :  { %v283_v8 = vshrl.u32 %v265_v34, %v281_v0  ;;  %v286_v61 = vadd.s32 127, %v285_v51  ;;  %v1005_v15 = vclz %v1633_v6  ;;  %v360_v29 = vsel %vm346_vm3, %v357_v59, %v359_v26 }
 0x100   :  { %v2141_v31 = vmul.u32.u64.low %v2098_v10, %v356_v60  ;;  %v2142_v34 = vmul.u32.u64.high %v2098_v10, %v356_v60, %v2141_v31  ;;  %v2153_v37 = vmul.u32.u64.low %v2098_v10, %v360_v29  ;;  %v2154_v38 = vmul.u32.u64.high %v2098_v10, %v360_v29, %v2153_v37  ;;  %v1716_v51 = vpop.f32.mrf.mxu1 }
 0x101   :  { %v284_v2 = vor.u32 %v283_v8, %v282_v49  ;;  %v287_v23 = vshll.u32 %v286_v61, 23  ;;  %v1634_v28 = vadd.s32 4294967294, %v1005_v15  ;;  %v302_v40 = vadd.s32 3, %v298_v24 }
 0x102   :  { %v993_v43 = vadd.s32 %v2073_v39, %v2079_v44  ;;  %v1051_v45 = vadd.s32 1, %v1636_v3  ;;  %v1023_v56 = vsub.s32 4, %v2105_v58  ;;  %v368_v63 = vmul.u32 %v2098_v10, %v352_v36 }
 0x103   :  { %v288_v35 = vor.u32 4788187, %v287_v23  ;;  %vm1635_vm8 = vcmp.lt.s32.totalorder %v1634_v28, 0  ;;  %v291_v62 = vcvt.s32.f32 %v284_v2  ;;  %v371_v0 = vadd.s32 1, %v2142_v34 }
 0x104   :  { %v1008_v27 = vsel %vm1635_vm8, 0, %v1634_v28  ;;  %vm370_vm9 = vc.u32 %v2154_v38, %v2141_v31  ;;  %vm1052_vm10 = vcmp.gt.s32.totalorder %v1051_v45, 0  ;;  %v1024_v10 = vsel %vm939_vm6, %v1023_v56, %v2105_v58 }
 0x105   :  { %v289_v25 = vand.u32 2147483647, %v288_v35  ;;  %v1009_v57 = vsub.s32 32, %v1008_v27  ;;  %v1013_v16 = vsub.s32 4294967266, %v1008_v27  ;;  %v1010_v4 = vshll.u32 %v2124_v52, %v1008_v27 }
 0x106   :  { %v372_v49 = vsel %vm370_vm9, %v371_v0, %v2142_v34  ;;  %v1053_v6 = vsel %vm1052_vm10, %v1051_v45, 0  ;;  %v1048_v52 = vand.u32 8388607, %v1041_v12  ;;  %v2174_v13 = vadd.f32 %v1978_v18, %v2000_v41 }
 0x107   :  { %v292_v55 = vmul.f32 %v291_v62, %v289_v25  ;;  %v1011_v39 = vshrl.u32 %v993_v43, %v1009_v57  ;;  %v1014_v44 = vadd.s32 127, %v1013_v16  ;;  %v373_v59 = vadd.s32 %v372_v49, %v368_v63 }
 0x108   :  { %v1055_v8 = vand.u32 31, %v1053_v6  ;;  %v2178_v17 = vand.u32 3, %v302_v40  ;;  %v1026_v23 = vsel %vm2147_vm7, 0, %v1024_v10  ;;  %vm315_vm11 = vcmp.lt.s32.totalorder %v1995_v33, 0 }
 0x109   :  { %v293_v30 = vxor.u32 2147483648, %v292_v55  ;;  %v1012_v61 = vor.u32 %v1011_v39, %v1010_v4  ;;  %v1015_v60 = vshll.u32 %v1014_v44, 23  ;;  %v374_v20 = vadd.s32 536870912, %v373_v59 }
 0x10a   :  { %v1056_v3 = vsub.s32 32, %v1055_v8  ;;  %v1058_v24 = vshll.u32 %v1869_v1, %v1055_v8  ;;  %v1061_v34 = vshll.u32 %v1870_v5, %v1055_v8  ;;  %v2189_v36 = vadd.s32 3, %v1026_v23 }
 0x10b   :  { %v294_v15 = vsel %vm211_vm15, %v293_v30, %v292_v55  ;;  %v1016_v2 = vor.u32 4788187, %v1015_v60  ;;  %v1019_v41 = vcvt.s32.f32 %v1012_v61  ;;  %v375_v26 = vshrl.u32 %v374_v20, 30 }
 0x10c   :  { %v297_v58 = vsel %vm2114_vm0, %v1981_v21, %v294_v15  ;;  %v1059_v28 = vshrl.u32 %v1870_v5, %v1056_v3  ;;  %v1062_v35 = vshrl.u32 %v1871_v7, %v1056_v3  ;;  %v1064_v37 = vshll.u32 %v1871_v7, %v1055_v8 }
 0x10d   :  { %1791 = vcosq.f32 %v297_v58  ;;  %v1017_v29 = vand.u32 2147483647, %v1016_v2  ;;  %v376_v32 = vshll.u32 %v375_v26, 30  ;;  %v1065_v40 = vshrl.u32 %v1872_v9, %v1056_v3 }
 0x10e   :  { %1793 = vsinq.f32 %v297_v58  ;;  %v1054_v45 = vshrl.u32 %v1053_v6, 5  ;;  %v1067_v25 = vshll.u32 %v1872_v9, %v1055_v8  ;;  %v1068_v62 = vshrl.u32 %v1873_v11, %v1056_v3 }
 0x10f   :  { %v1020_v43 = vmul.f32 %v1019_v41, %v1017_v29  ;;  %v2196_v27 = vsub.s32 %v373_v59, %v376_v32  ;;  %v1049_v56 = vor.u32 8388608, %v1048_v52  ;;  %v1060_v57 = vor.u32 %v1059_v28, %v1058_v24 }
 0x110   :  { %v1070_v16 = vshll.u32 %v1873_v11, %v1055_v8  ;;  %v1063_v0 = vor.u32 %v1062_v35, %v1061_v34  ;;  %v1069_v51 = vor.u32 %v1068_v62, %v1067_v25  ;;  %v1071_v55 = vshrl.u32 %v1874_v19, %v1056_v3 }
 0x111   :  { %v1021_v63 = vxor.u32 2147483648, %v1020_v43  ;;  %v369_v4 = vadd.s32 %v2141_v31, %v2154_v38  ;;  %v379_v39 = vsub.s32 0, %v2196_v27  ;;  %v1066_v44 = vor.u32 %v1065_v40, %v1064_v37 }
 0x112   :  { %v420_v49 = vand.u32 2139095040, %v2174_v13  ;;  %vm308_vm12 = vcmp.eq.s32.totalorder %v2178_v17, 2  ;;  %v399_v30 = vsub.s32 4, %v375_v26  ;;  %v1057_v10 = vshrl.u32 %v1869_v1, %v1056_v3 }
 0x113   :  { %v1022_v6 = vsel %vm939_vm6, %v1021_v63, %v1020_v43  ;;  %vm1073_vm13 = vcmp.lt.s32.totalorder %v1054_v45, 1  ;;  %vm305_vm14 = vcmp.eq.s32.totalorder %v2178_v17, 0  ;;  %v1609_v38 = vmin.u32 %v379_v39, %v2196_v27 }
 0x114   :  { %v1025_v31 = vsel %vm2147_vm7, %v1984_v22, %v1022_v6  ;;  %v1072_v59 = vor.u32 %v1071_v55, %v1070_v16  ;;  %vm1076_vm15 = vcmp.lt.s32.totalorder %v1054_v45, 4  ;;  %vm304_vm0 = vcmp.lt.s32.totalorder %v2178_v17, 2 }
 0x115   :  { %1795 = vcosq.f32 %v1025_v31  ;;  %v1081_v8 = vsel %vm1073_vm13, %v1060_v57, %v1063_v0  ;;  %v1082_v61 = vsel %vm1076_vm15, %v1069_v51, 920167782  ;;  %v1089_v60 = vshll.u32 %v1049_v56, 8 }
 0x116   :  { %vm301_vm1 = vweird.f32 %v1981_v21  ;;  %1797 = vsinq.f32 %v1025_v31  ;;  %vm2219_vm2 = vcmp.le.f32.partialorder %v313_v47, 0.7853982  ;;  %v381_v52 = vclz %v1609_v38 }
 0x117   :  { %vm1075_vm3 = vcmp.lt.s32.totalorder %v1054_v45, 3  ;;  %v1078_v15 = vsel %vm1076_vm15, %v1066_v44, 2102212464  ;;  %v400_v20 = vsel %vm315_vm11, %v399_v30, %v375_v26  ;;  %vm1074_vm4 = vcmp.lt.s32.totalorder %v1054_v45, 2 }
 0x118   :  { %v1083_v3 = vsel %vm1075_vm3, %v1066_v44, %v1082_v61  ;;  %v1085_v58 = vsel %vm1073_vm13, %v1063_v0, %v1066_v44  ;;  %v1610_v2 = vadd.s32 4294967294, %v381_v52  ;;  %v1077_v23 = vsel %vm1073_vm13, %v1057_v10, %v1060_v57 }
 0x119   :  { %v1084_v24 = vsel %vm1074_vm4, %v1081_v8, %v1083_v3  ;;  %v1086_v47 = vsel %vm1076_vm15, %v1072_v59, 1326507024  ;;  %v1079_v28 = vsel %vm1075_vm3, %v1063_v0, %v1078_v15  ;;  %v421_v40 = vshrl.u32 %v420_v49, 23 }
 0x11a   :  { %v1792_v41 = vpop.eup %1791  ;;  %v1087_v29 = vsel %vm1075_vm3, %v1069_v51, %v1086_v47  ;;  %v2230_v34 = vmul.u32.u64.low %v1089_v60, %v1084_v24  ;;  %v2231_v35 = vmul.u32.u64.high %v1089_v60, %v1084_v24, %v2230_v34  ;;  %vm1611_vm5 = vcmp.lt.s32.totalorder %v1610_v2, 0 }
 0x11b   :  { %v1794_v32 = vpop.eup %1793  ;;  %v309_v26 = vxor.u32 2147483648, %v1792_v41  ;;  %v1088_v37 = vsel %vm1074_vm4, %v1085_v58, %v1087_v29  ;;  %v384_v25 = vsel %vm1611_vm5, 0, %v1610_v2  ;;  %v1080_v0 = vsel %vm1074_vm4, %v1077_v23, %v1079_v28 }
 0x11c   :  { %v306_v43 = vxor.u32 2147483648, %v1794_v32  ;;  %v2235_v62 = vmul.u32.u64.low %v1089_v60, %v1088_v37  ;;  %v2236_v56 = vmul.u32.u64.high %v1089_v60, %v1088_v37, %v2235_v62  ;;  %v385_v16 = vsub.s32 32, %v384_v25 }
 0x11d   :  { %v310_v57 = vsel %vm308_vm12, %v309_v26, %v1794_v32  ;;  %v389_v63 = vsub.s32 4294967266, %v384_v25  ;;  %v1031_v55 = vand.u32 3, %v2189_v36  ;;  %v1099_v39 = vadd.s32 1, %v2231_v35 }
 0x11e   :  { %v307_v51 = vsel %vm305_vm14, %v1792_v41, %v306_v43  ;;  %v1612_v44 = vadd.s32 4294967169, %v421_v40  ;;  %v386_v6 = vshll.u32 %v2196_v27, %v384_v25  ;;  %v387_v30 = vshrl.u32 %v369_v4, %v385_v16 }
 0x11f   :  { %v311_v49 = vsel %vm304_vm0, %v307_v51, %v310_v57  ;;  %v390_v10 = vadd.s32 127, %v389_v63  ;;  %v402_v45 = vsel %vm2219_vm2, 0, %v400_v20  ;;  %v1096_v38 = vmul.u32 %v1089_v60, %v1080_v0 }
 0x120   :  { %v312_v31 = vsel %vm301_vm1, nan, %v311_v49  ;;  %vm1098_vm6 = vc.u32 %v2236_v56, %v2230_v34  ;;  %v388_v36 = vor.u32 %v387_v30, %v386_v6  ;;  %v427_v8 = vadd.s32 1, %v1612_v44 }
 0x121   :  { %1561 = vst [vmem:[#allocation2] sm:$0xff] %v312_v31  ;;  %v391_v59 = vshll.u32 %v390_v10, 23  ;;  %v1100_v17 = vsel %vm1098_vm6, %v1099_v39, %v2231_v35  ;;  %v417_v27 = vand.u32 2147483647, %v2174_v13  ;;  %vm1036_vm7 = vcmp.eq.s32.totalorder %v1031_v55, 2  ;;  %v2264_v35 = vpop.f32.mrf.mxu0 }
 0x122   :  { %v1101_v61 = vadd.s32 %v1100_v17, %v1096_v38  ;;  %v1796_v4 = vpop.eup %1795  ;;  %vm428_vm8 = vcmp.gt.s32.totalorder %v427_v8, 0  ;;  %v2258_v52 = vadd.f32 %v1978_v18, %v2002_v42  ;;  %v406_v20 = vadd.s32 3, %v402_v45 }
 0x123   :  { %v392_v21 = vor.u32 4788187, %v391_v59  ;;  %v1798_v60 = vpop.eup %1797  ;;  %v1037_v15 = vxor.u32 2147483648, %v1796_v4  ;;  %v429_v58 = vsel %vm428_vm8, %v427_v8, 0  ;;  %v395_v24 = vcvt.s32.f32 %v388_v36  ;;  %v1698_v43 = vpop.f32.mrf.mxu0 }
 0x124   :  { %v1102_v3 = vadd.s32 536870912, %v1101_v61  ;;  %v1034_v2 = vxor.u32 2147483648, %v1798_v60  ;;  %v431_v47 = vand.u32 31, %v429_v58  ;;  %vm1033_vm9 = vcmp.eq.s32.totalorder %v1031_v55, 0 }
 0x125   :  { %v393_v23 = vand.u32 2147483647, %v392_v21  ;;  %v1038_v41 = vsel %vm1036_vm7, %v1037_v15, %v1798_v60  ;;  %v424_v29 = vand.u32 8388607, %v417_v27  ;;  %vm1032_vm10 = vcmp.lt.s32.totalorder %v1031_v55, 2 }
 0x126   :  { %v2260_v28 = vshrl.u32 %v1102_v3, 30  ;;  %v1035_v42 = vsel %vm1033_vm9, %v1796_v4, %v1034_v2  ;;  %v432_v26 = vsub.s32 32, %v431_v47  ;;  %vm1029_vm12 = vweird.f32 %v1984_v22 }
 0x127   :  { %v396_v32 = vmul.f32 %v395_v24, %v393_v23  ;;  %v1039_v37 = vsel %vm1032_vm10, %v1035_v42, %v1038_v41  ;;  %v2268_v57 = vand.u32 3, %v406_v20  ;;  %v425_v0 = vor.u32 8388608, %v424_v29 }
 0x128   :  { %v1104_v40 = vshll.u32 %v2260_v28, 30  ;;  %v1040_v25 = vsel %vm1029_vm12, nan, %v1039_v37  ;;  %v435_v16 = vshrl.u32 %v1870_v5, %v432_v26  ;;  %v438_v51 = vshrl.u32 %v1871_v7, %v432_v26 }
 0x129   :  { %v397_v62 = vxor.u32 2147483648, %v396_v32  ;;  %1568 = vst [vmem:[#allocation2 + $0x38] sm:$0xff] %v1040_v25  ;;  %v1148_v55 = vand.u32 2139095040, %v2258_v52  ;;  %v430_v39 = vshrl.u32 %v429_v58, 5  ;;  %v434_v44 = vshll.u32 %v1869_v1, %v431_v47 }
 0x12a   :  { %v2271_v63 = vsub.s32 %v1101_v61, %v1104_v40  ;;  %v441_v49 = vshrl.u32 %v1872_v9, %v432_v26  ;;  %v437_v10 = vshll.u32 %v1870_v5, %v431_v47  ;;  %v440_v31 = vshll.u32 %v1871_v7, %v431_v47 }
 0x12b   :  { %v398_v22 = vsel %vm315_vm11, %v397_v62, %v396_v32  ;;  %v436_v45 = vor.u32 %v435_v16, %v434_v44  ;;  %v443_v38 = vshll.u32 %v1872_v9, %v431_v47  ;;  %v444_v36 = vshrl.u32 %v1873_v11, %v432_v26  ;;  %v2298_v16 = vpop.f32.mrf.mxu1 }
 0x12c   :  { %v401_v6 = vsel %vm2219_vm2, %v1995_v33, %v398_v22  ;;  %v1107_v30 = vsub.s32 0, %v2271_v63  ;;  %v439_v17 = vor.u32 %v438_v51, %v437_v10  ;;  %v442_v8 = vor.u32 %v441_v49, %v440_v31 }
 0x12d   :  { %1799 = vcosq.f32 %v401_v6  ;;  %v445_v61 = vor.u32 %v444_v36, %v443_v38  ;;  %v446_v14 = vshll.u32 %v1873_v11, %v431_v47  ;;  %v447_v4 = vshrl.u32 %v1874_v19, %v432_v26  ;;  %v1719_v10 = vpop.f32.mrf.mxu1 }
 0x12e   :  { %1801 = vsinq.f32 %v401_v6  ;;  %v1637_v59 = vmin.u32 %v1107_v30, %v2271_v63  ;;  %v465_v21 = vshll.u32 %v425_v0, 8  ;;  %v433_v15 = vshrl.u32 %v1869_v1, %v432_v26 }
 0x12f   :  { %vm449_vm11 = vcmp.lt.s32.totalorder %v430_v39, 1  ;;  %v1149_v20 = vshrl.u32 %v1148_v55, 23  ;;  %vm1043_vm13 = vcmp.lt.s32.totalorder %v2084_v46, 0  ;;  %v448_v3 = vor.u32 %v447_v4, %v446_v14 }
 0x130   :  { %v1109_v60 = vclz %v1637_v59  ;;  %vm450_vm14 = vcmp.lt.s32.totalorder %v430_v39, 2  ;;  %vm451_vm15 = vcmp.lt.s32.totalorder %v430_v39, 3  ;;  %vm452_vm0 = vcmp.lt.s32.totalorder %v430_v39, 4 }
 0x131   :  { %v454_v2 = vsel %vm452_vm0, %v442_v8, 2102212464  ;;  %v457_v23 = vsel %vm449_vm11, %v436_v45, %v439_v17  ;;  %v458_v24 = vsel %vm452_vm0, %v445_v61, 920167782  ;;  %v453_v41 = vsel %vm449_vm11, %v433_v15, %v436_v45 }
 0x132   :  { %v1638_v58 = vadd.s32 4294967294, %v1109_v60  ;;  %v459_v47 = vsel %vm451_vm15, %v442_v8, %v458_v24  ;;  %v461_v29 = vsel %vm449_vm11, %v439_v17, %v442_v8  ;;  %v462_v42 = vsel %vm452_vm0, %v448_v3, 1326507024 }
 0x133   :  { %v455_v32 = vsel %vm451_vm15, %v439_v17, %v454_v2  ;;  %v460_v26 = vsel %vm450_vm14, %v457_v23, %v459_v47  ;;  %v463_v37 = vsel %vm451_vm15, %v445_v61, %v462_v42  ;;  %v1097_v0 = vadd.s32 %v2230_v34, %v2236_v56 }
 0x134   :  { %vm1639_vm1 = vcmp.lt.s32.totalorder %v1638_v58, 0  ;;  %v464_v43 = vsel %vm450_vm14, %v461_v29, %v463_v37  ;;  %v2294_v25 = vmul.u32.u64.low %v465_v21, %v460_v26  ;;  %v2295_v62 = vmul.u32.u64.high %v465_v21, %v460_v26, %v2294_v25 }
 0x135   :  { %v1112_v40 = vsel %vm1639_vm1, 0, %v1638_v58  ;;  %v1127_v22 = vsub.s32 4, %v2260_v28  ;;  %vm2305_vm2 = vcmp.le.f32.partialorder %v1041_v12, 0.7853982  ;;  %v1640_v30 = vadd.s32 4294967169, %v1149_v20 }
 0x136   :  { %v1113_v51 = vsub.s32 32, %v1112_v40  ;;  %v1117_v55 = vsub.s32 4294967266, %v1112_v40  ;;  %v2309_v49 = vmul.u32.u64.low %v465_v21, %v464_v43  ;;  %v2310_v6 = vmul.u32.u64.high %v465_v21, %v464_v43, %v2309_v49 }
 0x137   :  { %v1114_v31 = vshll.u32 %v2271_v63, %v1112_v40  ;;  %v456_v34 = vsel %vm450_vm14, %v453_v41, %v455_v32  ;;  %vm408_vm3 = vcmp.lt.s32.totalorder %v2268_v57, 2  ;;  %vm409_vm4 = vcmp.eq.s32.totalorder %v2268_v57, 0 }
 0x138   :  { %v1115_v45 = vshrl.u32 %v1097_v0, %v1113_v51  ;;  %v1118_v38 = vadd.s32 127, %v1117_v55  ;;  %v475_v12 = vadd.s32 1, %v2295_v62  ;;  %v1155_v56 = vadd.s32 1, %v1640_v30 }
 0x139   :  { %v1128_v8 = vsel %vm1043_vm13, %v1127_v22, %v2260_v28  ;;  %v1145_v63 = vand.u32 2147483647, %v2258_v52  ;;  %v472_v39 = vmul.u32 %v465_v21, %v456_v34  ;;  %vm474_vm5 = vc.u32 %v2310_v6, %v2294_v25 }
 0x13a   :  { %v1800_v36 = vpop.eup %1799  ;;  %v1116_v59 = vor.u32 %v1115_v45, %v1114_v31  ;;  %v1119_v17 = vshll.u32 %v1118_v38, 23  ;;  %vm1156_vm6 = vcmp.gt.s32.totalorder %v1155_v56, 0  ;;  %vm412_vm7 = vcmp.eq.s32.totalorder %v2268_v57, 2 }
 0x13b   :  { %v1802_v61 = vpop.eup %1801  ;;  %v413_v14 = vxor.u32 2147483648, %v1800_v36  ;;  %v476_v15 = vsel %vm474_vm5, %v475_v12, %v2295_v62  ;;  %v1130_v3 = vsel %vm2305_vm2, 0, %v1128_v8  ;;  %v1157_v58 = vsel %vm1156_vm6, %v1155_v56, 0 }
 0x13c   :  { %v410_v4 = vxor.u32 2147483648, %v1802_v61  ;;  %v1120_v60 = vor.u32 4788187, %v1119_v17  ;;  %v477_v28 = vadd.s32 %v476_v15, %v472_v39  ;;  %v1123_v23 = vcvt.s32.f32 %v1116_v59 }
 0x13d   :  { %v414_v20 = vsel %vm412_vm7, %v413_v14, %v1802_v61  ;;  %v1159_v24 = vand.u32 31, %v1157_v58  ;;  %vm405_vm8 = vweird.f32 %v1995_v33  ;;  %v1152_v29 = vand.u32 8388607, %v1145_v63 }
 0x13e   :  { %v411_v2 = vsel %vm409_vm4, %v1800_v36, %v410_v4  ;;  %v1121_v21 = vand.u32 2147483647, %v1120_v60  ;;  %v478_v47 = vadd.s32 536870912, %v477_v28  ;;  %v1134_v26 = vadd.s32 3, %v1130_v3 }
 0x13f   :  { %v415_v41 = vsel %vm408_vm3, %v411_v2, %v414_v20  ;;  %v1160_v37 = vsub.s32 32, %v1159_v24  ;;  %v1162_v43 = vshll.u32 %v1869_v1, %v1159_v24  ;;  %v1165_v62 = vshll.u32 %v1870_v5, %v1159_v24 }
 0x140   :  { %v416_v42 = vsel %vm405_vm8, nan, %v415_v41  ;;  %v1124_v32 = vmul.f32 %v1123_v23, %v1121_v21  ;;  %v2334_v40 = vshrl.u32 %v478_v47, 30  ;;  %v1168_v33 = vshll.u32 %v1871_v7, %v1159_v24 }
 0x141   :  { %1562 = vst [vmem:[#allocation2 + $0x8] sm:$0xff] %v416_v42  ;;  %v1163_v57 = vshrl.u32 %v1870_v5, %v1160_v37  ;;  %v1166_v51 = vshrl.u32 %v1871_v7, %v1160_v37  ;;  %v1171_v55 = vshll.u32 %v1872_v9, %v1159_v24  ;;  %v1153_v49 = vor.u32 8388608, %v1152_v29 }
 0x142   :  { %v1125_v0 = vxor.u32 2147483648, %v1124_v32  ;;  %v480_v22 = vshll.u32 %v2334_v40, 30  ;;  %v1169_v30 = vshrl.u32 %v1872_v9, %v1160_v37  ;;  %v1172_v10 = vshrl.u32 %v1873_v11, %v1160_v37 }
 0x143   :  { %v1158_v45 = vshrl.u32 %v1157_v58, 5  ;;  %v1174_v38 = vshll.u32 %v1873_v11, %v1159_v24  ;;  %v2350_v34 = vadd.f32 %v1978_v18, %v2005_v53  ;;  %v1164_v36 = vor.u32 %v1163_v57, %v1162_v43 }
 0x144   :  { %v1126_v31 = vsel %vm1043_vm13, %v1125_v0, %v1124_v32  ;;  %v2355_v56 = vsub.s32 %v477_v28, %v480_v22  ;;  %v1170_v59 = vor.u32 %v1169_v30, %v1168_v33  ;;  %v1167_v17 = vor.u32 %v1166_v51, %v1165_v62  ;;  %v2379_v51 = vpop.f32.mrf.mxu0 }
 0x145   :  { %v1129_v12 = vsel %vm2305_vm2, %v2084_v46, %v1126_v31  ;;  %v1173_v8 = vor.u32 %v1172_v10, %v1171_v55  ;;  %v1175_v61 = vshrl.u32 %v1874_v19, %v1160_v37  ;;  %v1161_v39 = vshrl.u32 %v1869_v1, %v1160_v37 }
 0x146   :  { %1803 = vcosq.f32 %v1129_v12  ;;  %v483_v14 = vsub.s32 0, %v2355_v56  ;;  %vm1180_vm9 = vcmp.lt.s32.totalorder %v1158_v45, 4  ;;  %v524_v53 = vand.u32 2139095040, %v2350_v34 }
 0x147   :  { %1805 = vsinq.f32 %v1129_v12  ;;  %v1176_v18 = vor.u32 %v1175_v61, %v1174_v38  ;;  %v2361_v44 = vand.u32 3, %v1134_v26  ;;  %vm1177_vm10 = vcmp.lt.s32.totalorder %v1158_v45, 1  ;;  %v1701_v38 = vpop.f32.mrf.mxu0 }
 0x148   :  { %v1613_v4 = vmin.u32 %v483_v14, %v2355_v56  ;;  %v1182_v60 = vsel %vm1180_vm9, %v1170_v59, 2102212464  ;;  %vm1178_vm12 = vcmp.lt.s32.totalorder %v1158_v45, 2  ;;  %v1185_v15 = vsel %vm1177_vm10, %v1164_v36, %v1167_v17 }
 0x149   :  { %v1186_v20 = vsel %vm1180_vm9, %v1173_v8, 920167782  ;;  %v1193_v3 = vshll.u32 %v1153_v49, 8  ;;  %vm419_vm11 = vcmp.lt.s32.totalorder %v2174_v13, 0  ;;  %vm1179_vm13 = vcmp.lt.s32.totalorder %v1158_v45, 3 }
 0x14a   :  { %v485_v28 = vclz %v1613_v4  ;;  %v1181_v58 = vsel %vm1177_vm10, %v1161_v39, %v1164_v36  ;;  %v1189_v2 = vsel %vm1177_vm10, %v1167_v17, %v1170_v59  ;;  %v1183_v21 = vsel %vm1179_vm13, %v1167_v17, %v1182_v60 }
 0x14b   :  { %v1187_v23 = vsel %vm1179_vm13, %v1170_v59, %v1186_v20  ;;  %v1190_v24 = vsel %vm1180_vm9, %v1176_v18, 1326507024  ;;  %v525_v41 = vshrl.u32 %v524_v53, 23  ;;  %v521_v32 = vand.u32 2147483647, %v2350_v34 }
 0x14c   :  { %v1614_v47 = vadd.s32 4294967294, %v485_v28  ;;  %v1188_v29 = vsel %vm1178_vm12, %v1185_v15, %v1187_v23  ;;  %v1191_v42 = vsel %vm1179_vm13, %v1173_v8, %v1190_v24  ;;  %v1184_v33 = vsel %vm1178_vm12, %v1181_v58, %v1183_v21 }
 0x14d   :  { %v1192_v26 = vsel %vm1178_vm12, %v1189_v2, %v1191_v42  ;;  %v2371_v37 = vmul.u32.u64.low %v1193_v3, %v1188_v29  ;;  %v2372_v43 = vmul.u32.u64.high %v1193_v3, %v1188_v29, %v2371_v37  ;;  %v1616_v62 = vadd.s32 4294967169, %v525_v41 }
 0x14e   :  { %vm1615_vm14 = vcmp.lt.s32.totalorder %v1614_v47, 0  ;;  %v2376_v0 = vmul.u32.u64.low %v1193_v3, %v1192_v26  ;;  %v2377_v57 = vmul.u32.u64.high %v1193_v3, %v1192_v26, %v2376_v0  ;;  %vm1133_vm15 = vweird.f32 %v2084_v46 }
 0x14f   :  { %vm2384_vm0 = vcmp.le.f32.partialorder %v417_v27, 0.7853982  ;;  %v488_v22 = vsel %vm1615_vm14, 0, %v1614_v47  ;;  %v503_v49 = vsub.s32 4, %v2334_v40  ;;  %v531_v30 = vadd.s32 1, %v1616_v62 }
 0x150   :  { %vm1140_vm1 = vcmp.eq.s32.totalorder %v2361_v44, 2  ;;  %v473_v10 = vadd.s32 %v2294_v25, %v2310_v6  ;;  %v489_v31 = vsub.s32 32, %v488_v22  ;;  %v493_v45 = vsub.s32 4294967266, %v488_v22 }
 0x151   :  { %v1200_v12 = vmul.u32 %v1193_v3, %v1184_v33  ;;  %v1203_v36 = vadd.s32 1, %v2372_v43  ;;  %v528_v27 = vand.u32 8388607, %v521_v32  ;;  %vm532_vm2 = vcmp.gt.s32.totalorder %v531_v30, 0  ;;  %v2408_v3 = vld [vmem:[%s2876_s2] ss:$0 sm:$0xff] }
 0x152   :  { %v490_v17 = vshll.u32 %v2355_v56, %v488_v22  ;;  %v491_v8 = vshrl.u32 %v473_v10, %v489_v31  ;;  %v494_v61 = vadd.s32 127, %v493_v45  ;;  %vm1202_vm3 = vc.u32 %v2377_v57, %v2371_v37 }
 0x153   :  { %v1804_v59 = vpop.eup %1803  ;;  %v504_v6 = vsel %vm419_vm11, %v503_v49, %v2334_v40  ;;  %v1204_v39 = vsel %vm1202_vm3, %v1203_v36, %v2372_v43  ;;  %v533_v18 = vsel %vm532_vm2, %v531_v30, 0  ;;  %vm1137_vm4 = vcmp.eq.s32.totalorder %v2361_v44, 0 }
 0x154   :  { %v1806_v14 = vpop.eup %1805  ;;  %v1141_v25 = vxor.u32 2147483648, %v1804_v59  ;;  %v492_v4 = vor.u32 %v491_v8, %v490_v17  ;;  %v495_v60 = vshll.u32 %v494_v61, 23  ;;  %v1205_v15 = vadd.s32 %v1204_v39, %v1200_v12 }
 0x155   :  { %v1138_v53 = vxor.u32 2147483648, %v1806_v14  ;;  %v535_v20 = vand.u32 31, %v533_v18  ;;  %v2412_v40 = vadd.f32 %v2408_v3, %v2007_v54  ;;  %vm1136_vm5 = vcmp.lt.s32.totalorder %v2361_v44, 2 }
 0x156   :  { %v1142_v56 = vsel %vm1140_vm1, %v1141_v25, %v1806_v14  ;;  %v496_v58 = vor.u32 4788187, %v495_v60  ;;  %v1206_v2 = vadd.s32 536870912, %v1205_v15  ;;  %v506_v23 = vsel %vm2384_vm0, 0, %v504_v6 }
 0x157   :  { %v1139_v28 = vsel %vm1137_vm4, %v1804_v59, %v1138_v53  ;;  %v529_v24 = vor.u32 8388608, %v528_v27  ;;  %v536_v41 = vsub.s32 32, %v535_v20  ;;  %v499_v42 = vcvt.s32.f32 %v492_v4 }
 0x158   :  { %v1143_v21 = vsel %vm1136_vm5, %v1139_v28, %v1142_v56  ;;  %v497_v29 = vand.u32 2147483647, %v496_v58  ;;  %v2419_v26 = vshrl.u32 %v1206_v2, 30  ;;  %v1252_v62 = vand.u32 2139095040, %v2412_v40 }
 0x159   :  { %v1144_v47 = vsel %vm1133_vm15, nan, %v1143_v21  ;;  %v539_v54 = vshrl.u32 %v1870_v5, %v536_v41  ;;  %v542_v44 = vshrl.u32 %v1871_v7, %v536_v41  ;;  %v545_v43 = vshrl.u32 %v1872_v9, %v536_v41 }
 0x15a   :  { %1569 = vst [vmem:[#allocation2 + $0x40] sm:$0xff] %v1144_v47  ;;  %v500_v33 = vmul.f32 %v499_v42, %v497_v29  ;;  %v1208_v0 = vshll.u32 %v2419_v26, 30  ;;  %v538_v22 = vshll.u32 %v1869_v1, %v535_v20  ;;  %v541_v46 = vshll.u32 %v1870_v5, %v535_v20 }
 0x15b   :  { %v534_v49 = vshrl.u32 %v533_v18, 5  ;;  %v544_v30 = vshll.u32 %v1871_v7, %v535_v20  ;;  %v547_v10 = vshll.u32 %v1872_v9, %v535_v20  ;;  %v548_v31 = vshrl.u32 %v1873_v11, %v536_v41 }
 0x15c   :  { %v501_v45 = vxor.u32 2147483648, %v500_v33  ;;  %v2431_v38 = vsub.s32 %v1205_v15, %v1208_v0  ;;  %v540_v12 = vor.u32 %v539_v54, %v538_v22  ;;  %v543_v36 = vor.u32 %v542_v44, %v541_v46 }
 0x15d   :  { %v546_v27 = vor.u32 %v545_v43, %v544_v30  ;;  %v549_v59 = vor.u32 %v548_v31, %v547_v10  ;;  %v550_v17 = vshll.u32 %v1873_v11, %v535_v20  ;;  %v551_v8 = vshrl.u32 %v1874_v19, %v536_v41 }
 0x15e   :  { %v502_v61 = vsel %vm419_vm11, %v501_v45, %v500_v33  ;;  %v510_v14 = vadd.s32 3, %v506_v23  ;;  %v1211_v25 = vsub.s32 0, %v2431_v38  ;;  %v569_v6 = vshll.u32 %v529_v24, 8 }
 0x15f   :  { %v505_v39 = vsel %vm2384_vm0, %v2174_v13, %v502_v61  ;;  %v537_v18 = vshrl.u32 %v1869_v1, %v536_v41  ;;  %v552_v53 = vor.u32 %v551_v8, %v550_v17  ;;  %v1253_v4 = vshrl.u32 %v1252_v62, 23 }
 0x160   :  { %1807 = vcosq.f32 %v505_v39  ;;  %v1641_v60 = vmin.u32 %v1211_v25, %v2431_v38  ;;  %vm553_vm6 = vcmp.lt.s32.totalorder %v534_v49, 1  ;;  %vm556_vm7 = vcmp.lt.s32.totalorder %v534_v49, 4 }
 0x161   :  { %1809 = vsinq.f32 %v505_v39  ;;  %v558_v15 = vsel %vm556_vm7, %v546_v27, 2102212464  ;;  %v561_v56 = vsel %vm553_vm6, %v540_v12, %v543_v36  ;;  %v562_v20 = vsel %vm556_vm7, %v549_v59, 920167782 }
 0x162   :  { %v1213_v28 = vclz %v1641_v60  ;;  %vm554_vm8 = vcmp.lt.s32.totalorder %v534_v49, 2  ;;  %vm555_vm9 = vcmp.lt.s32.totalorder %v534_v49, 3  ;;  %v557_v58 = vsel %vm553_vm6, %v537_v18, %v540_v12 }
 0x163   :  { %v559_v2 = vsel %vm555_vm9, %v543_v36, %v558_v15  ;;  %v563_v55 = vsel %vm555_vm9, %v546_v27, %v562_v20  ;;  %v565_v21 = vsel %vm553_vm6, %v543_v36, %v546_v27  ;;  %v566_v23 = vsel %vm556_vm7, %v552_v53, 1326507024 }
 0x164   :  { %v1642_v24 = vadd.s32 4294967294, %v1213_v28  ;;  %v1231_v41 = vsub.s32 4, %v2419_v26  ;;  %v564_v47 = vsel %vm554_vm8, %v561_v56, %v563_v55  ;;  %v567_v29 = vsel %vm555_vm9, %v549_v59, %v566_v23 }
 0x165   :  { %v560_v42 = vsel %vm554_vm8, %v557_v58, %v559_v2  ;;  %v568_v54 = vsel %vm554_vm8, %v565_v21, %v567_v29  ;;  %v2444_v44 = vmul.u32.u64.low %v569_v6, %v564_v47  ;;  %v2445_v43 = vmul.u32.u64.high %v569_v6, %v564_v47, %v2444_v44 }
 0x166   :  { %vm1643_vm10 = vcmp.lt.s32.totalorder %v1642_v24, 0  ;;  %v2448_v62 = vmul.u32.u64.low %v569_v6, %v568_v54  ;;  %v2449_v33 = vmul.u32.u64.high %v569_v6, %v568_v54, %v2448_v62  ;;  %v1644_v0 = vadd.s32 4294967169, %v1253_v4 }
 0x167   :  { %vm1147_vm12 = vcmp.lt.s32.totalorder %v2258_v52, 0  ;;  %v1201_v22 = vadd.s32 %v2371_v37, %v2377_v57  ;;  %v1216_v46 = vsel %vm1643_vm10, 0, %v1642_v24  ;;  %v511_v45 = vand.u32 3, %v510_v14 }
 0x168   :  { %v1217_v49 = vsub.s32 32, %v1216_v46  ;;  %v1221_v30 = vsub.s32 4294967266, %v1216_v46  ;;  %v1232_v10 = vsel %vm1147_vm12, %v1231_v41, %v2419_v26  ;;  %v1259_v31 = vadd.s32 1, %v1644_v0 }
 0x169   :  { %vm2459_vm11 = vcmp.le.f32.partialorder %v1145_v63, 0.7853982  ;;  %v576_v36 = vmul.u32 %v569_v6, %v560_v42  ;;  %v579_v27 = vadd.s32 1, %v2445_v43  ;;  %v1218_v37 = vshll.u32 %v2431_v38, %v1216_v46 }
 0x16a   :  { %v1219_v57 = vshrl.u32 %v1201_v22, %v1217_v49  ;;  %v1222_v59 = vadd.s32 127, %v1221_v30  ;;  %vm578_vm13 = vc.u32 %v2449_v33, %v2444_v44  ;;  %v1234_v26 = vsel %vm2459_vm11, 0, %v1232_v10 }
 0x16b   :  { %v580_v17 = vsel %vm578_vm13, %v579_v27, %v2445_v43  ;;  %v1249_v63 = vand.u32 2147483647, %v2412_v40  ;;  %vm1260_vm14 = vcmp.gt.s32.totalorder %v1259_v31, 0  ;;  %vm509_vm15 = vweird.f32 %v2174_v13 }
 0x16c   :  { %v1220_v8 = vor.u32 %v1219_v57, %v1218_v37  ;;  %v1223_v61 = vshll.u32 %v1222_v59, 23  ;;  %v581_v14 = vadd.s32 %v580_v17, %v576_v36  ;;  %v1261_v25 = vsel %vm1260_vm14, %v1259_v31, 0 }
 0x16d   :  { %v1808_v6 = vpop.eup %1807  ;;  %vm512_vm0 = vcmp.lt.s32.totalorder %v511_v45, 2  ;;  %vm513_vm1 = vcmp.eq.s32.totalorder %v511_v45, 0  ;;  %v1263_v38 = vand.u32 31, %v1261_v25  ;;  %vm516_vm2 = vcmp.eq.s32.totalorder %v511_v45, 2 }
 0x16e   :  { %v1810_v39 = vpop.eup %1809  ;;  %v517_v18 = vxor.u32 2147483648, %v1808_v6  ;;  %v1224_v53 = vor.u32 4788187, %v1223_v61  ;;  %v582_v4 = vadd.s32 536870912, %v581_v14  ;;  %v2472_v15 = vadd.s32 3, %v1234_v26 }
 0x16f   :  { %v514_v60 = vxor.u32 2147483648, %v1810_v39  ;;  %v1256_v56 = vand.u32 8388607, %v1249_v63  ;;  %v1264_v20 = vsub.s32 32, %v1263_v38  ;;  %v1227_v2 = vcvt.s32.f32 %v1220_v8 }
 0x170   :  { %v518_v28 = vsel %vm516_vm2, %v517_v18, %v1810_v39  ;;  %v1225_v58 = vand.u32 2147483647, %v1224_v53  ;;  %v2476_v55 = vshrl.u32 %v582_v4, 30  ;;  %v1266_v23 = vshll.u32 %v1869_v1, %v1263_v38 }
 0x171   :  { %v515_v21 = vsel %vm513_vm1, %v1808_v6, %v514_v60  ;;  %v1269_v24 = vshll.u32 %v1870_v5, %v1263_v38  ;;  %v2482_v41 = vadd.f32 %v2408_v3, %v2086_v48  ;;  %v1267_v54 = vshrl.u32 %v1870_v5, %v1264_v20 }
 0x172   :  { %v519_v47 = vsel %vm512_vm0, %v515_v21, %v518_v28  ;;  %v1228_v29 = vmul.f32 %v1227_v2, %v1225_v58  ;;  %v584_v42 = vshll.u32 %v2476_v55, 30  ;;  %v1270_v62 = vshrl.u32 %v1871_v7, %v1264_v20 }
 0x173   :  { %v520_v43 = vsel %vm509_vm15, nan, %v519_v47  ;;  %v1272_v0 = vshll.u32 %v1871_v7, %v1263_v38  ;;  %v1273_v22 = vshrl.u32 %v1872_v9, %v1264_v20  ;;  %v1257_v49 = vor.u32 8388608, %v1256_v56 }
 0x174   :  { %1563 = vst [vmem:[#allocation2 + $0x10] sm:$0xff] %v520_v43  ;;  %v1229_v46 = vxor.u32 2147483648, %v1228_v29  ;;  %v2492_v48 = vsub.s32 %v581_v14, %v584_v42  ;;  %v1275_v30 = vshll.u32 %v1872_v9, %v1263_v38  ;;  %v577_v10 = vadd.s32 %v2444_v44, %v2449_v33 }
 0x175   :  { %v1262_v31 = vshrl.u32 %v1261_v25, 5  ;;  %v1276_v13 = vshrl.u32 %v1873_v11, %v1264_v20  ;;  %v1278_v45 = vshll.u32 %v1873_v11, %v1263_v38  ;;  %v1268_v37 = vor.u32 %v1267_v54, %v1266_v23 }
 0x176   :  { %v1230_v36 = vsel %vm1147_vm12, %v1229_v46, %v1228_v29  ;;  %v587_v27 = vsub.s32 0, %v2492_v48  ;;  %v1279_v57 = vshrl.u32 %v1874_v19, %v1264_v20  ;;  %v1271_v26 = vor.u32 %v1270_v62, %v1269_v24 }
 0x177   :  { %v1233_v59 = vsel %vm2459_vm11, %v2258_v52, %v1230_v36  ;;  %v1274_v17 = vor.u32 %v1273_v22, %v1272_v0  ;;  %v1277_v44 = vor.u32 %v1276_v13, %v1275_v30  ;;  %v1265_v8 = vshrl.u32 %v1869_v1, %v1264_v20 }
 0x178   :  { %1811 = vcosq.f32 %v1233_v59  ;;  %v1617_v33 = vmin.u32 %v587_v27, %v2492_v48  ;;  %v1280_v61 = vor.u32 %v1279_v57, %v1278_v45  ;;  %vm1281_vm3 = vcmp.lt.s32.totalorder %v1262_v31, 1 }
 0x179   :  { %1813 = vsinq.f32 %v1233_v59  ;;  %v1297_v14 = vshll.u32 %v1257_v49, 8  ;;  %v628_v25 = vand.u32 2139095040, %v2482_v41  ;;  %vm1282_vm4 = vcmp.lt.s32.totalorder %v1262_v31, 2 }
 0x17a   :  { %v589_v6 = vclz %v1617_v33  ;;  %vm1283_vm5 = vcmp.lt.s32.totalorder %v1262_v31, 3  ;;  %vm1284_vm6 = vcmp.lt.s32.totalorder %v1262_v31, 4  ;;  %v1289_v38 = vsel %vm1281_vm3, %v1268_v37, %v1271_v26 }
 0x17b   :  { %v1286_v12 = vsel %vm1284_vm6, %v1274_v17, 2102212464  ;;  %v1290_v39 = vsel %vm1284_vm6, %v1277_v44, 920167782  ;;  %v1293_v18 = vsel %vm1281_vm3, %v1271_v26, %v1274_v17  ;;  %v1285_v4 = vsel %vm1281_vm3, %v1265_v8, %v1268_v37 }
 0x17c   :  { %v1618_v53 = vadd.s32 4294967294, %v589_v6  ;;  %v1291_v60 = vsel %vm1283_vm5, %v1274_v17, %v1290_v39  ;;  %v1294_v56 = vsel %vm1284_vm6, %v1280_v61, 1326507024  ;;  %v1287_v28 = vsel %vm1283_vm5, %v1271_v26, %v1286_v12 }
 0x17d   :  { %v1292_v20 = vsel %vm1282_vm4, %v1289_v38, %v1291_v60  ;;  %v1295_v58 = vsel %vm1283_vm5, %v1277_v44, %v1294_v56  ;;  %v629_v2 = vshrl.u32 %v628_v25, 23  ;;  %v607_v29 = vsub.s32 4, %v2476_v55 }
 0x17e   :  { %vm1619_vm7 = vcmp.lt.s32.totalorder %v1618_v53, 0  ;;  %v1296_v21 = vsel %vm1282_vm4, %v1293_v18, %v1295_v58  ;;  %v2511_v23 = vmul.u32.u64.low %v1297_v14, %v1292_v20  ;;  %v2512_v24 = vmul.u32.u64.high %v1297_v14, %v1292_v20, %v2511_v23 }
 0x17f   :  { %v592_v47 = vsel %vm1619_vm7, 0, %v1618_v53  ;;  %v2516_v42 = vmul.u32.u64.low %v1297_v14, %v1296_v21  ;;  %v2517_v54 = vmul.u32.u64.high %v1297_v14, %v1296_v21, %v2516_v42  ;;  %v1288_v0 = vsel %vm1282_vm4, %v1285_v4, %v1287_v28 }
 0x180   :  { %v593_v43 = vsub.s32 32, %v592_v47  ;;  %v597_v62 = vsub.s32 4294967266, %v592_v47  ;;  %v1620_v22 = vadd.s32 4294967169, %v629_v2  ;;  %v1239_v46 = vand.u32 3, %v2472_v15 }
 0x181   :  { %vm523_vm8 = vcmp.lt.s32.totalorder %v2350_v34, 0  ;;  %v594_v49 = vshll.u32 %v2492_v48, %v592_v47  ;;  %v625_v30 = vand.u32 2147483647, %v2482_v41  ;;  %v1307_v36 = vadd.s32 1, %v2512_v24 }
 0x182   :  { %v595_v13 = vshrl.u32 %v577_v10, %v593_v43  ;;  %v598_v45 = vadd.s32 127, %v597_v62  ;;  %v635_v27 = vadd.s32 1, %v1620_v22  ;;  %v608_v37 = vsel %vm523_vm8, %v607_v29, %v2476_v55 }
 0x183   :  { %v1304_v31 = vmul.u32 %v1297_v14, %v1288_v0  ;;  %vm1306_vm9 = vc.u32 %v2517_v54, %v2511_v23  ;;  %vm1237_vm12 = vweird.f32 %v2258_v52  ;;  %vm2534_vm11 = vcmp.le.f32.partialorder %v521_v32, 0.7853982 }
 0x184   :  { %v596_v15 = vor.u32 %v595_v13, %v594_v49  ;;  %v599_v57 = vshll.u32 %v598_v45, 23  ;;  %v1308_v59 = vsel %vm1306_vm9, %v1307_v36, %v2512_v24  ;;  %vm636_vm10 = vcmp.gt.s32.totalorder %v635_v27, 0 }
 0x185   :  { %v1812_v48 = vpop.eup %1811  ;;  %v1309_v26 = vadd.s32 %v1308_v59, %v1304_v31  ;;  %v637_v55 = vsel %vm636_vm10, %v635_v27, 0  ;;  %vm1244_vm13 = vcmp.eq.s32.totalorder %v1239_v46, 2  ;;  %v632_v8 = vand.u32 8388607, %v625_v30 }
 0x186   :  { %v1814_v17 = vpop.eup %1813  ;;  %v1245_v44 = vxor.u32 2147483648, %v1812_v48  ;;  %v600_v33 = vor.u32 4788187, %v599_v57  ;;  %v610_v14 = vsel %vm2534_vm11, 0, %v608_v37  ;;  %v639_v6 = vand.u32 31, %v637_v55 }
 0x187   :  { %v1242_v61 = vxor.u32 2147483648, %v1814_v17  ;;  %v1310_v25 = vadd.s32 536870912, %v1309_v26  ;;  %vm1241_vm14 = vcmp.eq.s32.totalorder %v1239_v46, 0  ;;  %v603_v38 = vcvt.s32.f32 %v596_v15 }
 0x188   :  { %v1246_v32 = vsel %vm1244_vm13, %v1245_v44, %v1814_v17  ;;  %v601_v12 = vand.u32 2147483647, %v600_v33  ;;  %vm1240_vm15 = vcmp.lt.s32.totalorder %v1239_v46, 2  ;;  %v640_v53 = vsub.s32 32, %v639_v6 }
 0x189   :  { %v1243_v39 = vsel %vm1241_vm14, %v1812_v48, %v1242_v61  ;;  %v2542_v18 = vshrl.u32 %v1310_v25, 30  ;;  %v614_v56 = vadd.s32 3, %v610_v14  ;;  %v633_v28 = vor.u32 8388608, %v632_v8 }
 0x18a   :  { %v1247_v4 = vsel %vm1240_vm15, %v1243_v39, %v1246_v32  ;;  %v604_v60 = vmul.f32 %v603_v38, %v601_v12  ;;  %v642_v2 = vshll.u32 %v1869_v1, %v639_v6  ;;  %v2550_v21 = vadd.f32 %v2408_v3, %v2158_v50 }
 0x18b   :  { %v1248_v20 = vsel %vm1237_vm12, nan, %v1247_v4  ;;  %v1312_v58 = vshll.u32 %v2542_v18, 30  ;;  %v643_v47 = vshrl.u32 %v1870_v5, %v640_v53  ;;  %v646_v29 = vshrl.u32 %v1871_v7, %v640_v53 }
 0x18c   :  { %1570 = vst [vmem:[#allocation2 + $0x48] sm:$0xff] %v1248_v20  ;;  %v605_v24 = vxor.u32 2147483648, %v604_v60  ;;  %v649_v42 = vshrl.u32 %v1872_v9, %v640_v53  ;;  %v645_v52 = vshll.u32 %v1870_v5, %v639_v6  ;;  %v648_v62 = vshll.u32 %v1871_v7, %v639_v6 }
 0x18d   :  { %v2555_v43 = vsub.s32 %v1309_v26, %v1312_v58  ;;  %v652_v0 = vshrl.u32 %v1873_v11, %v640_v53  ;;  %v638_v22 = vshrl.u32 %v637_v55, 5  ;;  %v644_v46 = vor.u32 %v643_v47, %v642_v2 }
 0x18e   :  { %v606_v50 = vsel %vm523_vm8, %v605_v24, %v604_v60  ;;  %v651_v49 = vshll.u32 %v1872_v9, %v639_v6  ;;  %v647_v36 = vor.u32 %v646_v29, %v645_v52  ;;  %v650_v27 = vor.u32 %v649_v42, %v648_v62 }
 0x18f   :  { %v609_v13 = vsel %vm2534_vm11, %v2350_v34, %v606_v50  ;;  %v1315_v45 = vsub.s32 0, %v2555_v43  ;;  %v654_v31 = vshll.u32 %v1873_v11, %v639_v6  ;;  %v655_v15 = vshrl.u32 %v1874_v19, %v640_v53 }
 0x190   :  { %1815 = vcosq.f32 %v609_v13  ;;  %v653_v37 = vor.u32 %v652_v0, %v651_v49  ;;  %v2569_v57 = vand.u32 3, %v614_v56  ;;  %v673_v48 = vshll.u32 %v633_v28, 8 }
 0x191   :  { %1817 = vsinq.f32 %v609_v13  ;;  %v1645_v59 = vmin.u32 %v1315_v45, %v2555_v43  ;;  %v641_v26 = vshrl.u32 %v1869_v1, %v640_v53  ;;  %v656_v10 = vor.u32 %v655_v15, %v654_v31 }
 0x192   :  { %vm657_vm0 = vcmp.lt.s32.totalorder %v638_v22, 1  ;;  %v1356_v55 = vand.u32 2139095040, %v2550_v21  ;;  %vm659_vm1 = vcmp.lt.s32.totalorder %v638_v22, 3  ;;  %vm660_vm2 = vcmp.lt.s32.totalorder %v638_v22, 4 }
 0x193   :  { %v1317_v17 = vclz %v1645_v59  ;;  %v665_v44 = vsel %vm657_vm0, %v644_v46, %v647_v36  ;;  %v662_v33 = vsel %vm660_vm2, %v650_v27, 2102212464  ;;  %v666_v8 = vsel %vm660_vm2, %v653_v37, 920167782 }
 0x194   :  { %v669_v61 = vsel %vm657_vm0, %v647_v36, %v650_v27  ;;  %v670_v14 = vsel %vm660_vm2, %v656_v10, 1326507024  ;;  %vm658_vm3 = vcmp.lt.s32.totalorder %v638_v22, 2  ;;  %v667_v6 = vsel %vm659_vm1, %v650_v27, %v666_v8 }
 0x195   :  { %v1646_v25 = vadd.s32 4294967294, %v1317_v17  ;;  %v671_v32 = vsel %vm659_vm1, %v653_v37, %v670_v14  ;;  %v661_v12 = vsel %vm657_vm0, %v641_v26, %v644_v46  ;;  %v668_v38 = vsel %vm658_vm3, %v665_v44, %v667_v6 }
 0x196   :  { %v672_v39 = vsel %vm658_vm3, %v669_v61, %v671_v32  ;;  %v1357_v53 = vshrl.u32 %v1356_v55, 23  ;;  %v663_v4 = vsel %vm659_vm1, %v647_v36, %v662_v33  ;;  %v1305_v24 = vadd.s32 %v2511_v23, %v2517_v54 }
 0x197   :  { %vm1647_vm4 = vcmp.lt.s32.totalorder %v1646_v25, 0  ;;  %v2579_v60 = vmul.u32.u64.low %v673_v48, %v672_v39  ;;  %v2580_v56 = vmul.u32.u64.high %v673_v48, %v672_v39, %v2579_v60  ;;  %vm613_vm5 = vweird.f32 %v2350_v34 }
 0x198   :  { %v1320_v28 = vsel %vm1647_vm4, 0, %v1646_v25  ;;  %v2582_v20 = vmul.u32.u64.low %v673_v48, %v668_v38  ;;  %v2583_v58 = vmul.u32.u64.high %v673_v48, %v668_v38, %v2582_v20  ;;  %v1648_v2 = vadd.s32 4294967169, %v1357_v53 }
 0x199   :  { %v1321_v47 = vsub.s32 32, %v1320_v28  ;;  %v1325_v29 = vsub.s32 4294967266, %v1320_v28  ;;  %vm616_vm6 = vcmp.lt.s32.totalorder %v2569_v57, 2  ;;  %v664_v42 = vsel %vm658_vm3, %v661_v12, %v663_v4 }
 0x19a   :  { %v1363_v52 = vadd.s32 1, %v1648_v2  ;;  %v1322_v62 = vshll.u32 %v2555_v43, %v1320_v28  ;;  %vm682_vm7 = vc.u32 %v2580_v56, %v2582_v20  ;;  %vm617_vm8 = vcmp.eq.s32.totalorder %v2569_v57, 0 }
 0x19b   :  { %v1323_v0 = vshrl.u32 %v1305_v24, %v1321_v47  ;;  %v1326_v50 = vadd.s32 127, %v1325_v29  ;;  %vm620_vm9 = vcmp.eq.s32.totalorder %v2569_v57, 2  ;;  %vm1251_vm10 = vcmp.lt.s32.totalorder %v2412_v40, 0 }
 0x19c   :  { %v683_v23 = vadd.s32 1, %v2583_v58  ;;  %vm1364_vm12 = vcmp.gt.s32.totalorder %v1363_v52, 0  ;;  %v680_v49 = vmul.u32 %v673_v48, %v664_v42  ;;  %v1353_v27 = vand.u32 2147483647, %v2550_v21 }
 0x19d   :  { %v1816_v54 = vpop.eup %1815  ;;  %v1324_v22 = vor.u32 %v1323_v0, %v1322_v62  ;;  %v1327_v46 = vshll.u32 %v1326_v50, 23  ;;  %v1365_v13 = vsel %vm1364_vm12, %v1363_v52, 0  ;;  %vm2602_vm11 = vcmp.le.f32.partialorder %v1249_v63, 0.7853982 }
 0x19e   :  { %v1818_v43 = vpop.eup %1817  ;;  %v621_v45 = vxor.u32 2147483648, %v1816_v54  ;;  %v684_v36 = vsel %vm682_vm7, %v683_v23, %v2583_v58  ;;  %v1367_v37 = vand.u32 31, %v1365_v13  ;;  %v1335_v26 = vsub.s32 4, %v2542_v18 }
 0x19f   :  { %v618_v31 = vxor.u32 2147483648, %v1818_v43  ;;  %v1328_v59 = vor.u32 4788187, %v1327_v46  ;;  %v685_v10 = vadd.s32 %v684_v36, %v680_v49  ;;  %v1331_v55 = vcvt.s32.f32 %v1324_v22 }
 0x1a0   :  { %v622_v48 = vsel %vm620_vm9, %v621_v45, %v1818_v43  ;;  %v1368_v17 = vsub.s32 32, %v1367_v37  ;;  %v1370_v44 = vshll.u32 %v1869_v1, %v1367_v37  ;;  %v1373_v63 = vshll.u32 %v1870_v5, %v1367_v37 }
 0x1a1   :  { %v619_v33 = vsel %vm617_vm8, %v1816_v54, %v618_v31  ;;  %v1329_v8 = vand.u32 2147483647, %v1328_v59  ;;  %v686_v61 = vadd.s32 536870912, %v685_v10  ;;  %v1376_v32 = vshll.u32 %v1871_v7, %v1367_v37 }
 0x1a2   :  { %v623_v14 = vsel %vm616_vm6, %v619_v33, %v622_v48  ;;  %v1371_v25 = vshrl.u32 %v1870_v5, %v1368_v17  ;;  %v1374_v6 = vshrl.u32 %v1871_v7, %v1368_v17  ;;  %v1377_v53 = vshrl.u32 %v1872_v9, %v1368_v17 }
 0x1a3   :  { %v624_v12 = vsel %vm613_vm5, nan, %v623_v14  ;;  %v1332_v38 = vmul.f32 %v1331_v55, %v1329_v8  ;;  %v2620_v39 = vshrl.u32 %v686_v61, 30  ;;  %v1360_v4 = vand.u32 8388607, %v1353_v27 }
 0x1a4   :  { %1564 = vst [vmem:[#allocation2 + $0x18] sm:$0xff] %v624_v12  ;;  %v1379_v57 = vshll.u32 %v1872_v9, %v1367_v37  ;;  %v1380_v60 = vshrl.u32 %v1873_v11, %v1368_v17  ;;  %v2629_v28 = vadd.f32 %v2408_v3, %v2264_v35  ;;  %v1336_v34 = vsel %vm1251_vm10, %v1335_v26, %v2542_v18 }
 0x1a5   :  { %v1333_v58 = vxor.u32 2147483648, %v1332_v38  ;;  %v688_v2 = vshll.u32 %v2620_v39, 30  ;;  %v1366_v24 = vshrl.u32 %v1365_v13, 5  ;;  %v1372_v47 = vor.u32 %v1371_v25, %v1370_v44 }
 0x1a6   :  { %v1378_v29 = vor.u32 %v1377_v53, %v1376_v32  ;;  %v1382_v42 = vshll.u32 %v1873_v11, %v1367_v37  ;;  %v1383_v52 = vshrl.u32 %v1874_v19, %v1368_v17  ;;  %v1375_v35 = vor.u32 %v1374_v6, %v1373_v63 }
 0x1a7   :  { %v1334_v62 = vsel %vm1251_vm10, %v1333_v58, %v1332_v38  ;;  %v2639_v0 = vsub.s32 %v685_v10, %v688_v2  ;;  %v1381_v50 = vor.u32 %v1380_v60, %v1379_v57  ;;  %v1338_v23 = vsel %vm2602_vm11, 0, %v1336_v34 }
 0x1a8   :  { %v1337_v18 = vsel %vm2602_vm11, %v2412_v40, %v1334_v62  ;;  %v1361_v54 = vor.u32 8388608, %v1360_v4  ;;  %v1384_v22 = vor.u32 %v1383_v52, %v1382_v42  ;;  %v1369_v49 = vshrl.u32 %v1869_v1, %v1368_v17 }
 0x1a9   :  { %1819 = vcosq.f32 %v1337_v18  ;;  %v691_v46 = vsub.s32 0, %v2639_v0  ;;  %vm1388_vm13 = vcmp.lt.s32.totalorder %v1366_v24, 4  ;;  %vm1385_vm14 = vcmp.lt.s32.totalorder %v1366_v24, 1 }
 0x1aa   :  { %1821 = vsinq.f32 %v1337_v18  ;;  %v1390_v13 = vsel %vm1388_vm13, %v1378_v29, 2102212464  ;;  %v732_v43 = vand.u32 2139095040, %v2629_v28  ;;  %vm1387_vm15 = vcmp.lt.s32.totalorder %v1366_v24, 3 }
 0x1ab   :  { %v1621_v45 = vmin.u32 %v691_v46, %v2639_v0  ;;  %v1393_v36 = vsel %vm1385_vm14, %v1372_v47, %v1375_v35  ;;  %v1394_v37 = vsel %vm1388_vm13, %v1381_v50, 920167782  ;;  %v1342_v31 = vadd.s32 3, %v1338_v23 }
 0x1ac   :  { %v1395_v15 = vsel %vm1387_vm15, %v1378_v29, %v1394_v37  ;;  %v1397_v59 = vsel %vm1385_vm14, %v1375_v35, %v1378_v29  ;;  %v1398_v26 = vsel %vm1388_vm13, %v1384_v22, 1326507024  ;;  %vm1386_vm0 = vcmp.lt.s32.totalorder %v1366_v24, 2 }
 0x1ad   :  { %v693_v10 = vclz %v1621_v45  ;;  %v1389_v48 = vsel %vm1385_vm14, %v1369_v49, %v1372_v47  ;;  %v1391_v55 = vsel %vm1387_vm15, %v1375_v35, %v1390_v13  ;;  %v1396_v17 = vsel %vm1386_vm0, %v1393_v36, %v1395_v15 }
 0x1ae   :  { %v1399_v44 = vsel %vm1387_vm15, %v1381_v50, %v1398_v26  ;;  %v1401_v33 = vshll.u32 %v1361_v54, 8  ;;  %v733_v8 = vshrl.u32 %v732_v43, 23  ;;  %vm627_vm1 = vcmp.lt.s32.totalorder %v2482_v41, 0 }
 0x1af   :  { %v1622_v61 = vadd.s32 4294967294, %v693_v10  ;;  %v1400_v63 = vsel %vm1386_vm0, %v1397_v59, %v1399_v44  ;;  %v1392_v12 = vsel %vm1386_vm0, %v1389_v48, %v1391_v55  ;;  %v1343_v53 = vand.u32 3, %v1342_v31 }
 0x1b0   :  { %v2650_v14 = vmul.u32.u64.low %v1401_v33, %v1400_v63  ;;  %v2651_v25 = vmul.u32.u64.high %v1401_v33, %v1400_v63, %v2650_v14  ;;  %v2653_v6 = vmul.u32.u64.low %v1401_v33, %v1396_v17  ;;  %v2654_v32 = vmul.u32.u64.high %v1401_v33, %v1396_v17, %v2653_v6 }
 0x1b1   :  { %vm1623_vm2 = vcmp.lt.s32.totalorder %v1622_v61, 0  ;;  %v1624_v38 = vadd.s32 4294967169, %v733_v8  ;;  %vm2660_vm3 = vcmp.le.f32.partialorder %v625_v30, 0.7853982  ;;  %v711_v60 = vsub.s32 4, %v2620_v39 }
 0x1b2   :  { %v696_v57 = vsel %vm1623_vm2, 0, %v1622_v61  ;;  %v681_v58 = vadd.s32 %v2582_v20, %v2580_v56  ;;  %v1408_v47 = vmul.u32 %v1401_v33, %v1392_v12  ;;  %vm1410_vm4 = vc.u32 %v2651_v25, %v2653_v6 }
 0x1b3   :  { %v697_v34 = vsub.s32 32, %v696_v57  ;;  %v701_v2 = vsub.s32 4294967266, %v696_v57  ;;  %v739_v24 = vadd.s32 1, %v1624_v38  ;;  %v1411_v29 = vadd.s32 1, %v2654_v32 }
 0x1b4   :  { %v729_v30 = vand.u32 2147483647, %v2629_v28  ;;  %v698_v42 = vshll.u32 %v2639_v0, %v696_v57  ;;  %vm1345_vm6 = vcmp.eq.s32.totalorder %v1343_v53, 0  ;;  %v712_v56 = vsel %vm627_vm1, %v711_v60, %v2620_v39 }
 0x1b5   :  { %v699_v52 = vshrl.u32 %v681_v58, %v697_v34  ;;  %v702_v62 = vadd.s32 127, %v701_v2  ;;  %vm740_vm5 = vcmp.gt.s32.totalorder %v739_v24, 0  ;;  %v1412_v20 = vsel %vm1410_vm4, %v1411_v29, %v2654_v32 }
 0x1b6   :  { %v1820_v35 = vpop.eup %1819  ;;  %v741_v50 = vsel %vm740_vm5, %v739_v24, 0  ;;  %v1413_v46 = vadd.s32 %v1412_v20, %v1408_v47  ;;  %vm1348_vm7 = vcmp.eq.s32.totalorder %v1343_v53, 2  ;;  %v736_v0 = vand.u32 8388607, %v729_v30 }
 0x1b7   :  { %v1822_v18 = vpop.eup %1821  ;;  %v1349_v23 = vxor.u32 2147483648, %v1820_v35  ;;  %v700_v54 = vor.u32 %v699_v52, %v698_v42  ;;  %v703_v22 = vshll.u32 %v702_v62, 23  ;;  %v743_v13 = vand.u32 31, %v741_v50 }
 0x1b8   :  { %v1346_v49 = vxor.u32 2147483648, %v1822_v18  ;;  %v714_v36 = vsel %vm2660_vm3, 0, %v712_v56  ;;  %v1414_v39 = vadd.s32 536870912, %v1413_v46  ;;  %vm1341_vm8 = vweird.f32 %v2412_v40 }
 0x1b9   :  { %v1350_v43 = vsel %vm1348_vm7, %v1349_v23, %v1822_v18  ;;  %v704_v45 = vor.u32 4788187, %v703_v22  ;;  %vm1344_vm9 = vcmp.lt.s32.totalorder %v1343_v53, 2  ;;  %v744_v31 = vsub.s32 32, %v743_v13 }
 0x1ba   :  { %v1347_v37 = vsel %vm1345_vm6, %v1820_v35, %v1346_v49  ;;  %v707_v26 = vcvt.s32.f32 %v700_v54  ;;  %v2682_v10 = vshrl.u32 %v1414_v39, 30  ;;  %v718_v55 = vadd.s32 3, %v714_v36 }
 0x1bb   :  { %v1351_v15 = vsel %vm1344_vm9, %v1347_v37, %v1350_v43  ;;  %v705_v59 = vand.u32 2147483647, %v704_v45  ;;  %v737_v17 = vor.u32 8388608, %v736_v0  ;;  %v747_v8 = vshrl.u32 %v1870_v5, %v744_v31 }
 0x1bc   :  { %v1352_v48 = vsel %vm1341_vm8, nan, %v1351_v15  ;;  %v1416_v33 = vshll.u32 %v2682_v10, 30  ;;  %v750_v40 = vshrl.u32 %v1871_v7, %v744_v31  ;;  %v742_v61 = vshrl.u32 %v741_v50, 5 }
 0x1bd   :  { %1571 = vst [vmem:[#allocation2 + $0x50] sm:$0xff] %v1352_v48  ;;  %v708_v44 = vmul.f32 %v707_v26, %v705_v59  ;;  %v753_v63 = vshrl.u32 %v1872_v9, %v744_v31  ;;  %v756_v14 = vshrl.u32 %v1873_v11, %v744_v31  ;;  %v2691_v32 = vadd.f32 %v2408_v3, %v2298_v16 }
 0x1be   :  { %v2693_v38 = vsub.s32 %v1413_v46, %v1416_v33  ;;  %v746_v53 = vshll.u32 %v1869_v1, %v743_v13  ;;  %v749_v57 = vshll.u32 %v1870_v5, %v743_v13  ;;  %v752_v60 = vshll.u32 %v1871_v7, %v743_v13 }
 0x1bf   :  { %v709_v12 = vxor.u32 2147483648, %v708_v44  ;;  %v755_v58 = vshll.u32 %v1872_v9, %v743_v13  ;;  %v758_v34 = vshll.u32 %v1873_v11, %v743_v13  ;;  %v759_v2 = vshrl.u32 %v1874_v19, %v744_v31 }
 0x1c0   :  { %v1419_v16 = vsub.s32 0, %v2693_v38  ;;  %v748_v3 = vor.u32 %v747_v8, %v746_v53  ;;  %v751_v47 = vor.u32 %v750_v40, %v749_v57  ;;  %v754_v42 = vor.u32 %v753_v63, %v752_v60 }
 0x1c1   :  { %v710_v24 = vsel %vm627_vm1, %v709_v12, %v708_v44  ;;  %v757_v52 = vor.u32 %v756_v14, %v755_v58  ;;  %v760_v62 = vor.u32 %v759_v2, %v758_v34  ;;  %v2707_v35 = vand.u32 3, %v718_v55 }
 0x1c2   :  { %v713_v29 = vsel %vm2660_vm3, %v2482_v41, %v710_v24  ;;  %v1649_v56 = vmin.u32 %v1419_v16, %v2693_v38  ;;  %v777_v20 = vshll.u32 %v737_v17, 8  ;;  %v745_v50 = vshrl.u32 %v1869_v1, %v744_v31 }
 0x1c3   :  { %1823 = vcosq.f32 %v713_v29  ;;  %vm761_vm10 = vcmp.lt.s32.totalorder %v742_v61, 1  ;;  %v1460_v18 = vand.u32 2139095040, %v2691_v32  ;;  %vm763_vm12 = vcmp.lt.s32.totalorder %v742_v61, 3 }
 0x1c4   :  { %1825 = vsinq.f32 %v713_v29  ;;  %v1421_v23 = vclz %v1649_v56  ;;  %vm764_vm11 = vcmp.lt.s32.totalorder %v742_v61, 4  ;;  %v769_v4 = vsel %vm761_vm10, %v748_v3, %v751_v47 }
 0x1c5   :  { %v766_v54 = vsel %vm764_vm11, %v754_v42, 2102212464  ;;  %v770_v22 = vsel %vm764_vm11, %v757_v52, 920167782  ;;  %v773_v46 = vsel %vm761_vm10, %v751_v47, %v754_v42  ;;  %v774_v49 = vsel %vm764_vm11, %v760_v62, 1326507024 }
 0x1c6   :  { %v1650_v0 = vadd.s32 4294967294, %v1421_v23  ;;  %vm762_vm13 = vcmp.lt.s32.totalorder %v742_v61, 2  ;;  %v771_v13 = vsel %vm763_vm12, %v754_v42, %v770_v22  ;;  %v775_v43 = vsel %vm763_vm12, %v757_v52, %v774_v49 }
 0x1c7   :  { %v765_v45 = vsel %vm761_vm10, %v745_v50, %v748_v3  ;;  %v772_v36 = vsel %vm762_vm13, %v769_v4, %v771_v13  ;;  %v776_v39 = vsel %vm762_vm13, %v773_v46, %v775_v43  ;;  %v1461_v37 = vshrl.u32 %v1460_v18, 23 }
 0x1c8   :  { %vm1651_vm14 = vcmp.lt.s32.totalorder %v1650_v0, 0  ;;  %v767_v31 = vsel %vm763_vm12, %v751_v47, %v766_v54  ;;  %v2717_v15 = vmul.u32.u64.low %v777_v20, %v776_v39  ;;  %v2718_v59 = vmul.u32.u64.high %v777_v20, %v776_v39, %v2717_v15 }
 0x1c9   :  { %v1424_v26 = vsel %vm1651_vm14, 0, %v1650_v0  ;;  %v2720_v48 = vmul.u32.u64.low %v777_v20, %v772_v36  ;;  %v2721_v55 = vmul.u32.u64.high %v777_v20, %v772_v36, %v2720_v48  ;;  %v1652_v17 = vadd.s32 4294967169, %v1461_v37  ;;  %v1844_v37 = vld [vmem:[%s2876_s2] ss:$0 sm:$0xff]  ;;  %s1875_s2 = smov [#allocation2]  }
 0x1ca   :  { %v1409_v44 = vadd.s32 %v2653_v6, %v2651_v25  ;;  %v1425_v33 = vsub.s32 32, %v1424_v26  ;;  %v1429_v8 = vsub.s32 4294967266, %v1424_v26  ;;  %vm1355_vm15 = vcmp.lt.s32.totalorder %v2550_v21, 0  ;;  %s1579_s23 = sshll.u32 %s1875_s2, 4  ;;  %s1580_s23 = int_to_ptr.vmem [resolvable:$true] %s1579_s23 }
 0x1cb   :  { %v1439_v40 = vsub.s32 4, %v2682_v10  ;;  %v768_v63 = vsel %vm762_vm13, %v765_v45, %v767_v31  ;;  %v1467_v14 = vadd.s32 1, %v1652_v17  ;;  %vm717_vm0 = vweird.f32 %v2482_v41  ;;  %s1845_s1 = scalar_lea.vmem %s1580_s23, 1664  ;;  %p1850_p1 = scmp.lt.s32.totalorder %s1580_s23, %s1580_s23 }
 0x1cc   :  { %v1426_v12 = vshll.u32 %v2693_v38, %v1424_v26  ;;  %v1427_v53 = vshrl.u32 %v1409_v44, %v1425_v33  ;;  %v1430_v57 = vadd.s32 127, %v1429_v8  ;;  %vm786_vm1 = vc.u32 %v2718_v59, %v2720_v48  ;;  %p1846_p0 = scmp.ne.s32.totalorder %s1580_s23, %s1845_s1  ;;  %p1851_p2 = scmp.lt.s32.totalorder %s1845_s1, %s1845_s1 }
 0x1cd   :  { %vm720_vm2 = vcmp.lt.s32.totalorder %v2707_v35, 2  ;;  %vm721_vm3 = vcmp.eq.s32.totalorder %v2707_v35, 0  ;;  %vm2737_vm4 = vcmp.le.f32.partialorder %v1353_v27, 0.7853982  ;;  %v787_v6 = vadd.s32 1, %v2721_v55 }
 0x1ce   :  { %vm1468_vm5 = vcmp.gt.s32.totalorder %v1467_v14, 0  ;;  %v1428_v61 = vor.u32 %v1427_v53, %v1426_v12  ;;  %v1431_v38 = vshll.u32 %v1430_v57, 23  ;;  %v784_v60 = vmul.u32 %v777_v20, %v768_v63  ;;  %p1852_p3 = por %p1851_p2, %p1850_p1 }
 0x1cf   :  { %v1469_v58 = vsel %vm1468_vm5, %v1467_v14, 0  ;;  %vm724_vm6 = vcmp.eq.s32.totalorder %v2707_v35, 2  ;;  %v788_v2 = vsel %vm786_vm1, %v787_v6, %v2721_v55  ;;  %v1457_v24 = vand.u32 2147483647, %v2691_v32 }
 0x1d0   :  { %v1824_v34 = vpop.eup %1823  ;;  %v1471_v16 = vand.u32 31, %v1469_v58  ;;  %v1432_v47 = vor.u32 4788187, %v1431_v38  ;;  %v1440_v29 = vsel %vm1355_vm15, %v1439_v40, %v2682_v10  ;;  %v789_v42 = vadd.s32 %v788_v2, %v784_v60  ;;  %p1853_p4 = pnand %p1852_p3, %p1846_p0 }
 0x1d1   :  { %v1826_v3 = vpop.eup %1825  ;;  %v725_v27 = vxor.u32 2147483648, %v1824_v34  ;;  %v1435_v62 = vcvt.s32.f32 %v1428_v61  ;;  %v1464_v36 = vand.u32 8388607, %v1457_v24  ;;  %v2769_v35 = vadd.f32 %v1844_v37, %v2379_v51 }
 0x1d2   :  { %v722_v52 = vxor.u32 2147483648, %v1826_v3  ;;  %v1472_v56 = vsub.s32 32, %v1471_v16  ;;  %v1474_v20 = vshll.u32 %v1869_v1, %v1471_v16  ;;  %v1433_v18 = vand.u32 2147483647, %v1432_v47 }
 0x1d3   :  { %v726_v50 = vsel %vm724_vm6, %v725_v27, %v1826_v3  ;;  %v790_v23 = vadd.s32 536870912, %v789_v42  ;;  %v1477_v4 = vshll.u32 %v1870_v5, %v1471_v16  ;;  %v1480_v10 = vshll.u32 %v1871_v7, %v1471_v16 }
 0x1d4   :  { %v723_v54 = vsel %vm721_vm3, %v1824_v34, %v722_v52  ;;  %v1475_v22 = vshrl.u32 %v1870_v5, %v1472_v56  ;;  %v1478_v46 = vshrl.u32 %v1871_v7, %v1472_v56  ;;  %v1436_v0 = vmul.f32 %v1435_v62, %v1433_v18 }
 0x1d5   :  { %v727_v49 = vsel %vm720_vm2, %v723_v54, %v726_v50  ;;  %v2757_v13 = vshrl.u32 %v790_v23, 30  ;;  %v1481_v43 = vshrl.u32 %v1872_v9, %v1472_v56  ;;  %v1483_v39 = vshll.u32 %v1872_v9, %v1471_v16 }
 0x1d6   :  { %v728_v45 = vsel %vm717_vm0, nan, %v727_v49  ;;  %v1437_v31 = vxor.u32 2147483648, %v1436_v0  ;;  %v1442_v15 = vsel %vm2737_vm4, 0, %v1440_v29  ;;  %v1470_v26 = vshrl.u32 %v1469_v58, 5 }
 0x1d7   :  { %1565 = vst [vmem:[#allocation2 + $0x20] sm:$0xff] %v728_v45  ;;  %v792_v41 = vshll.u32 %v2757_v13, 30  ;;  %v1476_v55 = vor.u32 %v1475_v22, %v1474_v20  ;;  %v1484_v17 = vshrl.u32 %v1873_v11, %v1472_v56  ;;  %v1486_v44 = vshll.u32 %v1873_v11, %v1471_v16 }
 0x1d8   :  { %v1487_v33 = vshrl.u32 %v1874_v19, %v1472_v56  ;;  %v1438_v8 = vsel %vm1355_vm15, %v1437_v31, %v1436_v0  ;;  %v1479_v40 = vor.u32 %v1478_v46, %v1477_v4  ;;  %v1482_v63 = vor.u32 %v1481_v43, %v1480_v10 }
 0x1d9   :  { %v2779_v51 = vsub.s32 %v789_v42, %v792_v41  ;;  %v1441_v14 = vsel %vm2737_vm4, %v2550_v21, %v1438_v8  ;;  %v1465_v12 = vor.u32 8388608, %v1464_v36  ;;  %v1485_v53 = vor.u32 %v1484_v17, %v1483_v39 }
 0x1da   :  { %v1488_v57 = vor.u32 %v1487_v33, %v1486_v44  ;;  %1827 = vcosq.f32 %v1441_v14  ;;  %v1473_v61 = vshrl.u32 %v1869_v1, %v1472_v56  ;;  %v836_v38 = vand.u32 2139095040, %v2769_v35 }
 0x1db   :  { %v795_v6 = vsub.s32 0, %v2779_v51  ;;  %1829 = vsinq.f32 %v1441_v14  ;;  %vm1489_vm7 = vcmp.lt.s32.totalorder %v1470_v26, 1  ;;  %vm1491_vm8 = vcmp.lt.s32.totalorder %v1470_v26, 3 }
 0x1dc   :  { %vm1492_vm9 = vcmp.lt.s32.totalorder %v1470_v26, 4  ;;  %v1497_v34 = vsel %vm1489_vm7, %v1476_v55, %v1479_v40  ;;  %v1446_v2 = vadd.s32 3, %v1442_v15  ;;  %v1501_v3 = vsel %vm1489_vm7, %v1479_v40, %v1482_v63 }
 0x1dd   :  { %v1625_v60 = vmin.u32 %v795_v6, %v2779_v51  ;;  %v1494_v58 = vsel %vm1492_vm9, %v1482_v63, 2102212464  ;;  %v1498_v25 = vsel %vm1492_vm9, %v1485_v53, 920167782  ;;  %v1502_v27 = vsel %vm1492_vm9, %v1488_v57, 1326507024 }
 0x1de   :  { %v1499_v16 = vsel %vm1491_vm8, %v1482_v63, %v1498_v25  ;;  %vm1490_vm10 = vcmp.lt.s32.totalorder %v1470_v26, 2  ;;  %v1493_v29 = vsel %vm1489_vm7, %v1473_v61, %v1476_v55  ;;  %v1505_v42 = vshll.u32 %v1465_v12, 8 }
 0x1df   :  { %v797_v47 = vclz %v1625_v60  ;;  %v1495_v52 = vsel %vm1491_vm8, %v1479_v40, %v1494_v58  ;;  %v1500_v62 = vsel %vm1490_vm10, %v1497_v34, %v1499_v16  ;;  %v1503_v56 = vsel %vm1491_vm8, %v1485_v53, %v1502_v27 }
 0x1e0   :  { %v837_v20 = vshrl.u32 %v836_v38, 23  ;;  %v1504_v18 = vsel %vm1490_vm10, %v1501_v3, %v1503_v56  ;;  %v2791_v23 = vmul.u32.u64.low %v1505_v42, %v1500_v62  ;;  %v2792_v4 = vmul.u32.u64.high %v1505_v42, %v1500_v62, %v2791_v23 }
 0x1e1   :  { %v1626_v50 = vadd.s32 4294967294, %v797_v47  ;;  %v2795_v54 = vmul.u32.u64.low %v1505_v42, %v1504_v18  ;;  %v2796_v22 = vmul.u32.u64.high %v1505_v42, %v1504_v18, %v2795_v54  ;;  %v1496_v10 = vsel %vm1490_vm10, %v1493_v29, %v1495_v52 }
 0x1e2   :  { %v1628_v46 = vadd.s32 4294967169, %v837_v20  ;;  %v1447_v49 = vand.u32 3, %v1446_v2  ;;  %v833_v43 = vand.u32 2147483647, %v2769_v35  ;;  %v785_v36 = vadd.s32 %v2720_v48, %v2718_v59 }
 0x1e3   :  { %vm1627_vm12 = vcmp.lt.s32.totalorder %v1626_v50, 0  ;;  %v1515_v31 = vadd.s32 1, %v2792_v4  ;;  %v1512_v41 = vmul.u32 %v1505_v42, %v1496_v10  ;;  %vm1514_vm11 = vc.u32 %v2796_v22, %v2791_v23 }
 0x1e4   :  { %v800_v0 = vsel %vm1627_vm12, 0, %v1626_v50  ;;  %v843_v45 = vadd.s32 1, %v1628_v46  ;;  %vm1445_vm14 = vweird.f32 %v2550_v21  ;;  %v815_v59 = vsub.s32 4, %v2757_v13 }
 0x1e5   :  { %v801_v39 = vsub.s32 32, %v800_v0  ;;  %v805_v37 = vsub.s32 4294967266, %v800_v0  ;;  %v802_v15 = vshll.u32 %v2779_v51, %v800_v0  ;;  %v1516_v17 = vsel %vm1514_vm11, %v1515_v31, %v2792_v4 }
 0x1e6   :  { %vm844_vm13 = vcmp.gt.s32.totalorder %v843_v45, 0  ;;  %v1517_v48 = vadd.s32 %v1516_v17, %v1512_v41  ;;  %vm1452_vm15 = vcmp.eq.s32.totalorder %v1447_v49, 2  ;;  %v840_v57 = vand.u32 8388607, %v833_v43 }
 0x1e7   :  { %v803_v26 = vshrl.u32 %v785_v36, %v801_v39  ;;  %v806_v55 = vadd.s32 127, %v805_v37  ;;  %v845_v44 = vsel %vm844_vm13, %v843_v45, 0  ;;  %v1828_v33 = vpop.eup %1827  ;;  %vm1449_vm0 = vcmp.eq.s32.totalorder %v1447_v49, 0 }
 0x1e8   :  { %v847_v8 = vand.u32 31, %v845_v44  ;;  %v1830_v40 = vpop.eup %1829  ;;  %v1453_v51 = vxor.u32 2147483648, %v1828_v33  ;;  %v1518_v53 = vadd.s32 536870912, %v1517_v48  ;;  %vm731_vm1 = vcmp.lt.s32.totalorder %v2629_v28, 0 }
 0x1e9   :  { %v804_v63 = vor.u32 %v803_v26, %v802_v15  ;;  %v807_v14 = vshll.u32 %v806_v55, 23  ;;  %v1450_v12 = vxor.u32 2147483648, %v1830_v40  ;;  %vm1448_vm2 = vcmp.lt.s32.totalorder %v1447_v49, 2 }
 0x1ea   :  { %v848_v6 = vsub.s32 32, %v847_v8  ;;  %v1454_v61 = vsel %vm1452_vm15, %v1453_v51, %v1830_v40  ;;  %v816_v58 = vsel %vm731_vm1, %v815_v59, %v2757_v13  ;;  %v2814_v34 = vshrl.u32 %v1518_v53, 30 }
 0x1eb   :  { %v808_v38 = vor.u32 4788187, %v807_v14  ;;  %v1451_v60 = vsel %vm1449_vm0, %v1828_v33, %v1450_v12  ;;  %v811_v16 = vcvt.s32.f32 %v804_v63  ;;  %v841_v29 = vor.u32 8388608, %v840_v57 }
 0x1ec   :  { %v1455_v25 = vsel %vm1448_vm2, %v1451_v60, %v1454_v61  ;;  %v851_v3 = vshrl.u32 %v1870_v5, %v848_v6  ;;  %v1520_v47 = vshll.u32 %v2814_v34, 30  ;;  %v854_v42 = vshrl.u32 %v1871_v7, %v848_v6 }
 0x1ed   :  { %v809_v2 = vand.u32 2147483647, %v808_v38  ;;  %v1456_v27 = vsel %vm1445_vm14, nan, %v1455_v25  ;;  %v846_v62 = vshrl.u32 %v845_v44, 5  ;;  %v850_v13 = vshll.u32 %v1869_v1, %v847_v8 }
 0x1ee   :  { %1572 = vst [vmem:[#allocation2 + $0x58] sm:$0xff] %v1456_v27  ;;  %v857_v56 = vshrl.u32 %v1872_v9, %v848_v6  ;;  %v1521_v20 = vsub.s32 %v1517_v48, %v1520_v47  ;;  %v853_v50 = vshll.u32 %v1870_v5, %v847_v8  ;;  %v856_v18 = vshll.u32 %v1871_v7, %v847_v8 }
 0x1ef   :  { %v812_v52 = vmul.f32 %v811_v16, %v809_v2  ;;  %v860_v21 = vshrl.u32 %v1873_v11, %v848_v6  ;;  %v852_v54 = vor.u32 %v851_v3, %v850_v13  ;;  %v859_v46 = vshll.u32 %v1872_v9, %v847_v8 }
 0x1f0   :  { %v863_v10 = vshrl.u32 %v1874_v19, %v848_v6  ;;  %v1523_v49 = vsub.s32 0, %v1521_v20  ;;  %v855_v0 = vor.u32 %v854_v42, %v853_v50  ;;  %v858_v45 = vor.u32 %v857_v56, %v856_v18 }
 0x1f1   :  { %v813_v4 = vxor.u32 2147483648, %v812_v52  ;;  %v862_v36 = vshll.u32 %v1873_v11, %v847_v8  ;;  %vm2831_vm3 = vcmp.le.f32.partialorder %v729_v30, 0.7853982  ;;  %v861_v7 = vor.u32 %v860_v21, %v859_v46 }
 0x1f2   :  { %v818_v19 = vsel %vm2831_vm3, 0, %v816_v58  ;;  %v1653_v37 = vmin.u32 %v1523_v49, %v1521_v20  ;;  %vm865_vm4 = vcmp.lt.s32.totalorder %v846_v62, 1  ;;  %vm868_vm5 = vcmp.lt.s32.totalorder %v846_v62, 4 }
 0x1f3   :  { %v814_v5 = vsel %vm731_vm1, %v813_v4, %v812_v52  ;;  %v864_v31 = vor.u32 %v863_v10, %v862_v36  ;;  %v881_v11 = vshll.u32 %v841_v29, 8  ;;  %v870_v15 = vsel %vm868_vm5, %v858_v45, 2102212464 }
 0x1f4   :  { %v817_v9 = vsel %vm2831_vm3, %v2629_v28, %v814_v5  ;;  %v1525_v30 = vclz %v1653_v37  ;;  %v873_v41 = vsel %vm865_vm4, %v852_v54, %v855_v0  ;;  %v849_v26 = vshrl.u32 %v1869_v1, %v848_v6 }
 0x1f5   :  { %1831 = vcosq.f32 %v817_v9  ;;  %vm867_vm6 = vcmp.lt.s32.totalorder %v846_v62, 3  ;;  %v874_v55 = vsel %vm868_vm5, %v861_v7, 920167782  ;;  %v877_v17 = vsel %vm865_vm4, %v855_v0, %v858_v45 }
 0x1f6   :  { %1833 = vsinq.f32 %v817_v9  ;;  %v1654_v44 = vadd.s32 4294967294, %v1525_v30  ;;  %vm866_vm7 = vcmp.lt.s32.totalorder %v846_v62, 2  ;;  %v875_v33 = vsel %vm867_vm6, %v858_v45, %v874_v55 }
 0x1f7   :  { %v878_v59 = vsel %vm868_vm5, %v864_v31, 1326507024  ;;  %v869_v48 = vsel %vm865_vm4, %v849_v26, %v852_v54  ;;  %v871_v8 = vsel %vm867_vm6, %v855_v0, %v870_v15  ;;  %v876_v40 = vsel %vm866_vm7, %v873_v41, %v875_v33 }
 0x1f8   :  { %v879_v51 = vsel %vm867_vm6, %v861_v7, %v878_v59  ;;  %vm1655_vm8 = vcmp.lt.s32.totalorder %v1654_v44, 0  ;;  %v2845_v14 = vmul.u32.u64.low %v881_v11, %v876_v40  ;;  %v2846_v12 = vmul.u32.u64.high %v881_v11, %v876_v40, %v2845_v14 }
 0x1f9   :  { %v880_v63 = vsel %vm866_vm7, %v877_v17, %v879_v51  ;;  %v822_v53 = vadd.s32 3, %v818_v19  ;;  %v1528_v1 = vsel %vm1655_vm8, 0, %v1654_v44  ;;  %v1513_v61 = vadd.s32 %v2791_v23, %v2796_v22 }
 0x1fa   :  { %v2848_v57 = vmul.u32.u64.low %v881_v11, %v880_v63  ;;  %v2849_v6 = vmul.u32.u64.high %v881_v11, %v880_v63, %v2848_v57  ;;  %v1529_v38 = vsub.s32 32, %v1528_v1  ;;  %v1533_v60 = vsub.s32 4294967266, %v1528_v1 }
 0x1fb   :  { %v872_v58 = vsel %vm866_vm7, %v869_v48, %v871_v8  ;;  %v1530_v25 = vshll.u32 %v1521_v20, %v1528_v1  ;;  %v891_v3 = vadd.s32 1, %v2846_v12  ;;  %v823_v47 = vand.u32 3, %v822_v53 }
 0x1fc   :  { %v1531_v2 = vshrl.u32 %v1513_v61, %v1529_v38  ;;  %v1534_v16 = vadd.s32 127, %v1533_v60  ;;  %v888_v27 = vmul.u32 %v881_v11, %v872_v58  ;;  %vm890_vm9 = vc.u32 %v2849_v6, %v2845_v14 }
 0x1fd   :  { %v892_v52 = vsel %vm890_vm9, %v891_v3, %v2846_v12  ;;  %vm828_vm10 = vcmp.eq.s32.totalorder %v823_v47, 2  ;;  %vm825_vm12 = vcmp.eq.s32.totalorder %v823_v47, 0  ;;  %vm824_vm11 = vcmp.lt.s32.totalorder %v823_v47, 2 }
 0x1fe   :  { %v1532_v29 = vor.u32 %v1531_v2, %v1530_v25  ;;  %v1535_v42 = vshll.u32 %v1534_v16, 23  ;;  %v893_v13 = vadd.s32 %v892_v52, %v888_v27  ;;  %vm821_vm13 = vweird.f32 %v2629_v28 }
 0x1ff   :  { %vm1459_vm14 = vcmp.lt.s32.totalorder %v2691_v32, 0  ;;  %v1543_v39 = vsub.s32 4, %v2814_v34  ;;  %vm1458_vm15 = vcmp.le.f32.partialorder %v1457_v24, 0.7853982  ;;  %v889_v26 = vadd.s32 %v2845_v14, %v2849_v6 }
 0x200   :  { %v1536_v23 = vor.u32 4788187, %v1535_v42  ;;  %v894_v62 = vadd.s32 536870912, %v893_v13  ;;  %v1539_v21 = vcvt.s32.f32 %v1532_v29  ;;  %vm1549_vm4 = vweird.f32 %v2691_v32 }
 0x201   :  { %v1544_v28 = vsel %vm1459_vm14, %v1543_v39, %v2814_v34  ;;  %vm835_vm5 = vcmp.lt.s32.totalorder %v2769_v35, 0  ;;  %vm834_vm6 = vcmp.le.f32.partialorder %v833_v43, 0.7853982 }
 0x202   :  { %v1832_v56 = vpop.eup %1831  ;;  %v1537_v20 = vand.u32 2147483647, %v1536_v23  ;;  %v895_v54 = vshrl.u32 %v894_v62, 30  ;;  %v1546_v11 = vsel %vm1458_vm15, 0, %v1544_v28 }
 0x203   :  { %v1834_v22 = vpop.eup %1833  ;;  %v829_v50 = vxor.u32 2147483648, %v1832_v56  ;;  %v1550_v15 = vadd.s32 3, %v1546_v11 }
 0x204   :  { %v826_v18 = vxor.u32 2147483648, %v1834_v22  ;;  %v1540_v10 = vmul.f32 %v1539_v21, %v1537_v20  ;;  %v896_v0 = vshll.u32 %v895_v54, 30  ;;  %v919_v58 = vsub.s32 4, %v895_v54 }
 0x205   :  { %v830_v4 = vsel %vm828_vm10, %v829_v50, %v1834_v22  ;;  %v1551_v24 = vand.u32 3, %v1550_v15  ;;  %vm925_vm10 = vweird.f32 %v2769_v35 }
 0x206   :  { %v827_v46 = vsel %vm825_vm12, %v1832_v56, %v826_v18  ;;  %v1541_v36 = vxor.u32 2147483648, %v1540_v10  ;;  %v897_v5 = vsub.s32 %v893_v13, %v896_v0  ;;  %v920_v16 = vsel %vm835_vm5, %v919_v58, %v895_v54 }
 0x207   :  { %v831_v49 = vsel %vm824_vm11, %v827_v46, %v830_v4  ;;  %vm1556_vm1 = vcmp.eq.s32.totalorder %v1551_v24, 2  ;;  %vm1553_vm2 = vcmp.eq.s32.totalorder %v1551_v24, 0  ;;  %vm1552_vm3 = vcmp.lt.s32.totalorder %v1551_v24, 2 }
 0x208   :  { %v832_v45 = vsel %vm821_vm13, nan, %v831_v49  ;;  %v1542_v7 = vsel %vm1459_vm14, %v1541_v36, %v1540_v10  ;;  %v899_v19 = vsub.s32 0, %v897_v5  ;;  %v922_v3 = vsel %vm834_vm6, 0, %v920_v16 }
 0x209   :  { %1566 = vst [vmem:[#allocation2 + $0x28] sm:$0xff] %v832_v45  ;;  %v1545_v9 = vsel %vm1458_vm15, %v2691_v32, %v1542_v7  ;;  %v926_v27 = vadd.s32 3, %v922_v3 }
 0x20a   :  { %1835 = vcosq.f32 %v1545_v9  ;;  %v1629_v37 = vmin.u32 %v899_v19, %v897_v5 }
 0x20b   :  { %1837 = vsinq.f32 %v1545_v9  ;;  %v927_v32 = vand.u32 3, %v926_v27 }
 0x20c   :  { %v901_v31 = vclz %v1629_v37 }
 0x20d   :  { %vm932_vm7 = vcmp.eq.s32.totalorder %v927_v32, 2  ;;  %vm929_vm8 = vcmp.eq.s32.totalorder %v927_v32, 0  ;;  %vm928_vm9 = vcmp.lt.s32.totalorder %v927_v32, 2 }
 0x20e   :  { %v1630_v30 = vadd.s32 4294967294, %v901_v31 }
 0x210   :  { %vm1631_vm0 = vcmp.lt.s32.totalorder %v1630_v30, 0 }
 0x211   :  { %v904_v41 = vsel %vm1631_vm0, 0, %v1630_v30 }
 0x212   :  { %v905_v55 = vsub.s32 32, %v904_v41  ;;  %v909_v17 = vsub.s32 4294967266, %v904_v41  ;;  %v906_v44 = vshll.u32 %v897_v5, %v904_v41 }
 0x214   :  { %v907_v33 = vshrl.u32 %v889_v26, %v905_v55  ;;  %v910_v59 = vadd.s32 127, %v909_v17 }
 0x216   :  { %v908_v8 = vor.u32 %v907_v33, %v906_v44  ;;  %v911_v40 = vshll.u32 %v910_v59, 23 }
 0x217   :  { %v1836_v48 = vpop.eup %1835 }
 0x218   :  { %v1838_v34 = vpop.eup %1837  ;;  %v1557_v51 = vxor.u32 2147483648, %v1836_v48  ;;  %v912_v12 = vor.u32 4788187, %v911_v40  ;;  %v915_v14 = vcvt.s32.f32 %v908_v8 }
 0x219   :  { %v1554_v63 = vxor.u32 2147483648, %v1838_v34 }
 0x21a   :  { %v1558_v53 = vsel %vm1556_vm1, %v1557_v51, %v1838_v34  ;;  %v913_v57 = vand.u32 2147483647, %v912_v12 }
 0x21b   :  { %v1555_v1 = vsel %vm1553_vm2, %v1836_v48, %v1554_v63 }
 0x21c   :  { %v1559_v6 = vsel %vm1552_vm3, %v1555_v1, %v1558_v53  ;;  %v916_v38 = vmul.f32 %v915_v14, %v913_v57 }
 0x21d   :  { %v1560_v61 = vsel %vm1549_vm4, nan, %v1559_v6 }
 0x21e   :  { %1573 = vst [vmem:[#allocation2 + $0x60] sm:$0xff] %v1560_v61  ;;  %v917_v60 = vxor.u32 2147483648, %v916_v38 }
 0x220   :  { %v918_v25 = vsel %vm835_vm5, %v917_v60, %v916_v38 }
 0x221   :  { %v921_v2 = vsel %vm834_vm6, %v2769_v35, %v918_v25 }
 0x222   :  { %1839 = vcosq.f32 %v921_v2 }
 0x223   :  { %1841 = vsinq.f32 %v921_v2 }
 0x22f   :  { %v1840_v47 = vpop.eup %1839 }
 0x230   :  { %v1842_v29 = vpop.eup %1841  ;;  %v933_v42 = vxor.u32 2147483648, %v1840_v47 }
 0x231   :  { %v930_v52 = vxor.u32 2147483648, %v1842_v29 }
 0x232   :  { %v934_v13 = vsel %vm932_vm7, %v933_v42, %v1842_v29 }
 0x233   :  { %v931_v43 = vsel %vm929_vm8, %v1840_v47, %v930_v52 }
 0x234   :  { %v935_v56 = vsel %vm928_vm9, %v931_v43, %v934_v13 }
 0x235   :  { %v936_v23 = vsel %vm925_vm10, nan, %v935_v56 }
 0x236   :  { %1567 = vst [vmem:[#allocation2 + $0x30] sm:$0xff] %v936_v23 }
 0x237   :  { %1856 = shalt.err (!%p1853_p4)
}
 0x238   :  { %s1876_s24 = smov 128   ;;  %s1877_s25 = smov 8  }
 0x239   :  { %1585 = dma.vmem_to_hbm [thread:$0]  %s1580_s23, 1664, %s2877_s3, [#allocation3], %s1876_s24, %s1876_s24, %s1877_s25  }
 0x23a   :  { %1865 = dma.done.wait [#allocation3], 1664  }
 0x23b   :  { %1866 = vsyncadd [#allocation3], 4294965632 }
 0x23c   :  { %1589 = vsyncpa [#allocation3], 1 }

</bundles_post_ra>
